<compile_context>
chip_gen: v6e
topology: v6e:2x2x1
jax: 0.10.0
libtpu: 0.0.40
codegen_flags: <defaults>
</compile_context>

<pallas_src>
import jax
import jax.numpy as jnp
from jax.experimental import pallas as pl
from jax.experimental.pallas import tpu as pltpu

INPUT = 2
HIDDEN = 400
OUTPUT = 1

HIDDEN_PAD = 512   # 400 -> 512: multiple of 128 lanes, native MXU tiles
OUT_PAD = 128      # 1   -> 128: lane-dense output slab (unmasked stores)


def _round_up(n, m):
    return (n + m - 1) // m * m


def _cdiv(a, b):
    return (a + b - 1) // b


def _mlp_kernel(x_ref,
                w1_ref, b1_ref,
                w2_ref, b2_ref,
                w3_ref, b3_ref,
                w4_ref, b4_ref,
                w5_ref, b5_ref,
                o_ref):
    # x: (TM, 2) f32; w1: (2, 512) bf16; w2..w4: (512, 512) bf16;
    # w5: (512, 128) bf16; b1..b4: (1, 512) bf16; b5: (1, 128) f32;
    # o: (TM, 128) bf16.

    # fc1 (2 -> 512), no activation (matches the reference forward). K=2 would
    # waste >98% of a padded MXU pass, so do it as two bf16 broadcast
    # multiply-adds on the VPU.
    xb = x_ref[...].astype(jnp.bfloat16)
    w1 = w1_ref[...]
    h = xb[:, 0:1] * w1[0:1, :] + xb[:, 1:2] * w1[1:2, :] + b1_ref[...]

    def dense_relu(h_bf16, w_ref, b_ref):
        # MXU contraction with f32 accumulation, then a bf16 epilogue
        # (bias + ReLU) so the result feeds the next MXU pass directly.
        y = jnp.dot(h_bf16, w_ref[...], preferred_element_type=jnp.float32)
        return jnp.maximum(y.astype(jnp.bfloat16) + b_ref[...], 0.0)

    h = dense_relu(h, w2_ref, b2_ref)      # fc2 + ReLU
    h = dense_relu(h, w3_ref, b3_ref)      # fc3 + ReLU
    h = dense_relu(h, w4_ref, b4_ref)      # fc4 + ReLU

    # final (512 -> 128 padded): one MXU column pass, f32 bias add, then a
    # lane-dense bf16 store (half the writeback of f32).
    y = jnp.dot(h, w5_ref[...], preferred_element_type=jnp.float32) + b5_ref[...]
    o_ref[...] = y.astype(jnp.bfloat16)


def init_params(key):
    """Deterministic init mimicking PyTorch nn.Linear default (U[-1/sqrt(fan_in), +])."""
    dims = [
        ("fc1", INPUT, HIDDEN),
        ("fc2", HIDDEN, HIDDEN),
        ("fc3", HIDDEN, HIDDEN),
        ("fc4", HIDDEN, HIDDEN),
        ("final", HIDDEN, OUTPUT),
    ]
    params = {}
    for name, fan_in, fan_out in dims:
        key, kw, kb = jax.random.split(key, 3)
        bound = 1.0 / (fan_in ** 0.5)
        # stored directly in (in, out) layout == transpose of PyTorch's (out, in)
        w = jax.random.uniform(kw, (fan_in, fan_out), jnp.float32, -bound, bound)
        b = jax.random.uniform(kb, (fan_out,), jnp.float32, -bound, bound)
        params[name] = (w, b)
    return params


def prepare_params(params):
    """One-time wrapper-side prep: zero-pad HIDDEN->512 / OUTPUT->128, bf16
    weights + hidden biases (f32 accumulation stays inside the kernel)."""
    (w1, b1), (w2, b2), (w3, b3), (w4, b4), (w5, b5) = (
        params["fc1"], params["fc2"], params["fc3"], params["fc4"], params["final"]
    )

    def pad2(w, rows, cols, dtype):
        return jnp.pad(w, ((0, rows - w.shape[0]), (0, cols - w.shape[1]))).astype(dtype)

    def pad1(b, n, dtype):
        return jnp.pad(b, (0, n - b.shape[0])).reshape(1, n).astype(dtype)

    w1p = pad2(w1, INPUT, HIDDEN_PAD, jnp.bfloat16)
    w2p = pad2(w2, HIDDEN_PAD, HIDDEN_PAD, jnp.bfloat16)
    w3p = pad2(w3, HIDDEN_PAD, HIDDEN_PAD, jnp.bfloat16)
    w4p = pad2(w4, HIDDEN_PAD, HIDDEN_PAD, jnp.bfloat16)
    w5p = pad2(w5, HIDDEN_PAD, OUT_PAD, jnp.bfloat16)
    b1p = pad1(b1, HIDDEN_PAD, jnp.bfloat16)
    b2p = pad1(b2, HIDDEN_PAD, jnp.bfloat16)
    b3p = pad1(b3, HIDDEN_PAD, jnp.bfloat16)
    b4p = pad1(b4, HIDDEN_PAD, jnp.bfloat16)
    b5p = pad1(b5, OUT_PAD, jnp.float32)
    return (w1p, b1p, w2p, b2p, w3p, b3p, w4p, b4p, w5p, b5p)


def mlp_forward(x, prepared, *, tm=1024):
    """x: (B, INPUT) f32. prepared: output of prepare_params. Returns (B, OUTPUT) f32."""
    B = x.shape[0]
    # Ragged-friendly tile choice: pick the number of grid steps first, then a
    # tile that divides the lightly padded batch (<=7 padding rows per tile).
    # Force >=2 steps when there are enough rows so v7x's 2nd TC gets work.
    n_steps = max(_cdiv(B, tm), 2 if B >= 16 else 1)
    TM = _round_up(_cdiv(B, n_steps), 8)
    Bp = n_steps * TM
    if Bp != B:
        x = jnp.pad(x, ((0, Bp - B), (0, 0)))

    (w1p, b1p, w2p, b2p, w3p, b3p, w4p, b4p, w5p, b5p) = prepared

    def row_map(i):
        return (i, 0)

    def const_map(i):
        return (0, 0)

    in_specs = [
        pl.BlockSpec((TM, INPUT), row_map),
        pl.BlockSpec((INPUT, HIDDEN_PAD), const_map),
        pl.BlockSpec((1, HIDDEN_PAD), const_map),
        pl.BlockSpec((HIDDEN_PAD, HIDDEN_PAD), const_map),
        pl.BlockSpec((1, HIDDEN_PAD), const_map),
        pl.BlockSpec((HIDDEN_PAD, HIDDEN_PAD), const_map),
        pl.BlockSpec((1, HIDDEN_PAD), const_map),
        pl.BlockSpec((HIDDEN_PAD, HIDDEN_PAD), const_map),
        pl.BlockSpec((1, HIDDEN_PAD), const_map),
        pl.BlockSpec((HIDDEN_PAD, OUT_PAD), const_map),
        pl.BlockSpec((1, OUT_PAD), const_map),
    ]
    out_spec = pl.BlockSpec((TM, OUT_PAD), row_map)

    flops = 2 * Bp * (INPUT * HIDDEN_PAD
                      + 3 * HIDDEN_PAD * HIDDEN_PAD
                      + HIDDEN_PAD * OUT_PAD)
    bytes_accessed = (
        Bp * INPUT * 4 + Bp * OUT_PAD * 2
        + (w1p.size + w2p.size + w3p.size + w4p.size + w5p.size) * 2
        + (b1p.size + b2p.size + b3p.size + b4p.size) * 2 + b5p.size * 4)

    out = pl.pallas_call(
        _mlp_kernel,
        out_shape=jax.ShapeDtypeStruct((Bp, OUT_PAD), jnp.bfloat16),
        grid=(Bp // TM,),
        in_specs=in_specs,
        out_specs=out_spec,
        compiler_params=pltpu.CompilerParams(
            dimension_semantics=("parallel",),
            # Explicit limit so TM>=1024 fits on v5e (16 MiB default scoped
            # VMEM) while staying under v7x's 64 MiB physical VMEM.
            vmem_limit_bytes=48 * 1024 * 1024),
        cost_estimate=pl.CostEstimate(
            flops=flops, transcendentals=0, bytes_accessed=bytes_accessed),
    )(x, w1p, b1p, w2p, b2p, w3p, b3p, w4p, b4p, w5p, b5p)

    return out[:B, :OUTPUT].astype(jnp.float32)


def mlp_reference_f32(x, params):
    """Plain-JAX f32 reference with the original PyTorch semantics."""
    (w1, b1), (w2, b2), (w3, b3), (w4, b4), (w5, b5) = (
        params["fc1"], params["fc2"], params["fc3"], params["fc4"], params["final"]
    )
    h = x @ w1 + b1
    h = jnp.maximum(h @ w2 + b2, 0.0)
    h = jnp.maximum(h @ w3 + b3, 0.0)
    h = jnp.maximum(h @ w4 + b4, 0.0)
    return h @ w5 + b5


def mlp_reference_kernel_numerics(x, prepared):
    """Plain-JAX reference mirroring the kernel's bf16/padded numerics."""
    (w1p, b1p, w2p, b2p, w3p, b3p, w4p, b4p, w5p, b5p) = prepared
    xb = x.astype(jnp.bfloat16)
    h = xb[:, 0:1] * w1p[0:1, :] + xb[:, 1:2] * w1p[1:2, :] + b1p

    def dr(h, w, b):
        y = jnp.dot(h, w, preferred_element_type=jnp.float32)
        return jnp.maximum(y.astype(jnp.bfloat16) + b, 0.0)

    h = dr(h, w2p, b2p)
    h = dr(h, w3p, b3p)
    h = dr(h, w4p, b4p)
    y = jnp.dot(h, w5p, preferred_element_type=jnp.float32) + b5p
    return y.astype(jnp.bfloat16)[:, :OUTPUT].astype(jnp.float32)


if __name__ == "__main__":
    key = jax.random.PRNGKey(0)
    key, kx = jax.random.split(key)

    params = init_params(key)
    prepared = prepare_params(params)

    # small batch (single grid step)
    B = 8
    x = jax.random.normal(kx, (B, INPUT), dtype=jnp.float32)
    out = jax.block_until_ready(mlp_forward(x, prepared))
    assert out.shape == (B, OUTPUT), out.shape

    ref_exact = mlp_reference_kernel_numerics(x, prepared)
    assert jnp.allclose(out, ref_exact, atol=3e-2, rtol=3e-2), (out, ref_exact)

    ref_f32 = mlp_reference_f32(x, params)  # bf16 weights/acts => loose tolerance
    assert jnp.allclose(out, ref_f32, atol=1.5e-1, rtol=1.5e-1), (out, ref_f32)

    # also exercise the ragged multi-step grid path (B not a tile multiple):
    # with tm=1024 this now tiles as 2 x 304 rows (8 padded rows total).
    key, kx2 = jax.random.split(key)
    B2 = 600
    x2 = jax.random.normal(kx2, (B2, INPUT), dtype=jnp.float32)
    out2 = jax.block_until_ready(mlp_forward(x2, prepared))
    assert out2.shape == (B2, OUTPUT), out2.shape
    ref2 = mlp_reference_kernel_numerics(x2, prepared)
    assert jnp.allclose(out2, ref2, atol=3e-2, rtol=3e-2), (out2, ref2)
    ref2_f32 = mlp_reference_f32(x2, params)
    assert jnp.allclose(out2, ref2_f32, atol=1.5e-1, rtol=1.5e-1)

    print("KERNEL_OK")
</pallas_src>

<mosaic_0001>
module attributes {stable_mosaic.version = 11 : i64} {
  func.func @_mlp_kernel(%arg0: i32, %arg1: memref<8x2xf32, #tpu.memory_space<vmem>>, %arg2: memref<2x512xbf16, #tpu.memory_space<vmem>>, %arg3: memref<1x512xbf16, #tpu.memory_space<vmem>>, %arg4: memref<512x512xbf16, #tpu.memory_space<vmem>>, %arg5: memref<1x512xbf16, #tpu.memory_space<vmem>>, %arg6: memref<512x512xbf16, #tpu.memory_space<vmem>>, %arg7: memref<1x512xbf16, #tpu.memory_space<vmem>>, %arg8: memref<512x512xbf16, #tpu.memory_space<vmem>>, %arg9: memref<1x512xbf16, #tpu.memory_space<vmem>>, %arg10: memref<512x128xbf16, #tpu.memory_space<vmem>>, %arg11: memref<1x128xf32, #tpu.memory_space<vmem>>, %arg12: memref<8x128xbf16, #tpu.memory_space<vmem>>) attributes {dimension_semantics = [#tpu.dimension_semantics<parallel>], iteration_bounds = array<i64: 1>, scalar_prefetch = 0 : i64, scratch_operands = 0 : i64, tpu.core_type = #tpu.core_type<tc>, window_params = [{transform_indices = @transform_0, window_bounds = array<i64: 8, 2>}, {pipeline_mode = #tpu.pipeline_mode<synchronous>, transform_indices = @transform_1, window_bounds = array<i64: 2, 512>}, {pipeline_mode = #tpu.pipeline_mode<synchronous>, transform_indices = @transform_2, window_bounds = array<i64: 1, 512>}, {pipeline_mode = #tpu.pipeline_mode<synchronous>, transform_indices = @transform_3, window_bounds = array<i64: 512, 512>}, {pipeline_mode = #tpu.pipeline_mode<synchronous>, transform_indices = @transform_4, window_bounds = array<i64: 1, 512>}, {pipeline_mode = #tpu.pipeline_mode<synchronous>, transform_indices = @transform_5, window_bounds = array<i64: 512, 512>}, {pipeline_mode = #tpu.pipeline_mode<synchronous>, transform_indices = @transform_6, window_bounds = array<i64: 1, 512>}, {pipeline_mode = #tpu.pipeline_mode<synchronous>, transform_indices = @transform_7, window_bounds = array<i64: 512, 512>}, {pipeline_mode = #tpu.pipeline_mode<synchronous>, transform_indices = @transform_8, window_bounds = array<i64: 1, 512>}, {pipeline_mode = #tpu.pipeline_mode<synchronous>, transform_indices = @transform_9, window_bounds = array<i64: 512, 128>}, {pipeline_mode = #tpu.pipeline_mode<synchronous>, transform_indices = @transform_10, window_bounds = array<i64: 1, 128>}, {transform_indices = @transform_11, window_bounds = array<i64: 8, 128>}]} {
    %c0 = arith.constant 0 : index
    %c0_0 = arith.constant 0 : index
    %0 = vector.load %arg1[%c0, %c0_0] : memref<8x2xf32, #tpu.memory_space<vmem>>, vector<8x2xf32>
    %1 = arith.truncf %0 : vector<8x2xf32> to vector<8x2xbf16>
    %c0_1 = arith.constant 0 : index
    %c0_2 = arith.constant 0 : index
    %2 = vector.load %arg2[%c0_1, %c0_2] : memref<2x512xbf16, #tpu.memory_space<vmem>>, vector<2x512xbf16>
    %3 = vector.extract_strided_slice %1 {offsets = [0, 0], sizes = [8, 1], strides = [1, 1]} : vector<8x2xbf16> to vector<8x1xbf16>
    %4 = vector.extract_strided_slice %2 {offsets = [0, 0], sizes = [1, 512], strides = [1, 1]} : vector<2x512xbf16> to vector<1x512xbf16>
    %5 = vector.broadcast %3 : vector<8x1xbf16> to vector<8x512xbf16>
    %6 = vector.broadcast %4 : vector<1x512xbf16> to vector<8x512xbf16>
    %7 = arith.mulf %5, %6 : vector<8x512xbf16>
    %8 = vector.extract_strided_slice %1 {offsets = [0, 1], sizes = [8, 1], strides = [1, 1]} : vector<8x2xbf16> to vector<8x1xbf16>
    %9 = vector.extract_strided_slice %2 {offsets = [1, 0], sizes = [1, 512], strides = [1, 1]} : vector<2x512xbf16> to vector<1x512xbf16>
    %10 = vector.broadcast %8 : vector<8x1xbf16> to vector<8x512xbf16>
    %11 = vector.broadcast %9 : vector<1x512xbf16> to vector<8x512xbf16>
    %12 = arith.mulf %10, %11 : vector<8x512xbf16>
    %13 = arith.addf %7, %12 : vector<8x512xbf16>
    %c0_3 = arith.constant 0 : index
    %c0_4 = arith.constant 0 : index
    %14 = vector.load %arg3[%c0_3, %c0_4] : memref<1x512xbf16, #tpu.memory_space<vmem>>, vector<1x512xbf16>
    %15 = vector.broadcast %14 : vector<1x512xbf16> to vector<8x512xbf16>
    %16 = arith.addf %13, %15 : vector<8x512xbf16>
    %c0_5 = arith.constant 0 : index
    %c0_6 = arith.constant 0 : index
    %17 = vector.load %arg4[%c0_5, %c0_6] : memref<512x512xbf16, #tpu.memory_space<vmem>>, vector<512x512xbf16>
    %cst = arith.constant dense<0.000000e+00> : vector<8x512xf32>
    %18 = tpu.matmul %16, %17, %cst {dimension_numbers = #tpu.dot_dimension_numbers<[1], [0], [0], [1], [0, 0, 1, 1], [], []>} : vector<8x512xbf16>, vector<512x512xbf16>, vector<8x512xf32> -> vector<8x512xf32>
    %19 = arith.truncf %18 : vector<8x512xf32> to vector<8x512xbf16>
    %c0_7 = arith.constant 0 : index
    %c0_8 = arith.constant 0 : index
    %20 = vector.load %arg5[%c0_7, %c0_8] : memref<1x512xbf16, #tpu.memory_space<vmem>>, vector<1x512xbf16>
    %21 = vector.broadcast %20 : vector<1x512xbf16> to vector<8x512xbf16>
    %22 = arith.addf %19, %21 : vector<8x512xbf16>
    %cst_9 = arith.constant 0.000000e+00 : bf16
    %23 = vector.broadcast %cst_9 : bf16 to vector<8x512xbf16>
    %24 = arith.maximumf %22, %23 : vector<8x512xbf16>
    %c0_10 = arith.constant 0 : index
    %c0_11 = arith.constant 0 : index
    %25 = vector.load %arg6[%c0_10, %c0_11] : memref<512x512xbf16, #tpu.memory_space<vmem>>, vector<512x512xbf16>
    %cst_12 = arith.constant dense<0.000000e+00> : vector<8x512xf32>
    %26 = tpu.matmul %24, %25, %cst_12 {dimension_numbers = #tpu.dot_dimension_numbers<[1], [0], [0], [1], [0, 0, 1, 1], [], []>} : vector<8x512xbf16>, vector<512x512xbf16>, vector<8x512xf32> -> vector<8x512xf32>
    %27 = arith.truncf %26 : vector<8x512xf32> to vector<8x512xbf16>
    %c0_13 = arith.constant 0 : index
    %c0_14 = arith.constant 0 : index
    %28 = vector.load %arg7[%c0_13, %c0_14] : memref<1x512xbf16, #tpu.memory_space<vmem>>, vector<1x512xbf16>
    %29 = vector.broadcast %28 : vector<1x512xbf16> to vector<8x512xbf16>
    %30 = arith.addf %27, %29 : vector<8x512xbf16>
    %cst_15 = arith.constant 0.000000e+00 : bf16
    %31 = vector.broadcast %cst_15 : bf16 to vector<8x512xbf16>
    %32 = arith.maximumf %30, %31 : vector<8x512xbf16>
    %c0_16 = arith.constant 0 : index
    %c0_17 = arith.constant 0 : index
    %33 = vector.load %arg8[%c0_16, %c0_17] : memref<512x512xbf16, #tpu.memory_space<vmem>>, vector<512x512xbf16>
    %cst_18 = arith.constant dense<0.000000e+00> : vector<8x512xf32>
    %34 = tpu.matmul %32, %33, %cst_18 {dimension_numbers = #tpu.dot_dimension_numbers<[1], [0], [0], [1], [0, 0, 1, 1], [], []>} : vector<8x512xbf16>, vector<512x512xbf16>, vector<8x512xf32> -> vector<8x512xf32>
    %35 = arith.truncf %34 : vector<8x512xf32> to vector<8x512xbf16>
    %c0_19 = arith.constant 0 : index
    %c0_20 = arith.constant 0 : index
    %36 = vector.load %arg9[%c0_19, %c0_20] : memref<1x512xbf16, #tpu.memory_space<vmem>>, vector<1x512xbf16>
    %37 = vector.broadcast %36 : vector<1x512xbf16> to vector<8x512xbf16>
    %38 = arith.addf %35, %37 : vector<8x512xbf16>
    %cst_21 = arith.constant 0.000000e+00 : bf16
    %39 = vector.broadcast %cst_21 : bf16 to vector<8x512xbf16>
    %40 = arith.maximumf %38, %39 : vector<8x512xbf16>
    %c0_22 = arith.constant 0 : index
    %c0_23 = arith.constant 0 : index
    %41 = vector.load %arg10[%c0_22, %c0_23] : memref<512x128xbf16, #tpu.memory_space<vmem>>, vector<512x128xbf16>
    %cst_24 = arith.constant dense<0.000000e+00> : vector<8x128xf32>
    %42 = tpu.matmul %40, %41, %cst_24 {dimension_numbers = #tpu.dot_dimension_numbers<[1], [0], [0], [1], [0, 0, 1, 1], [], []>} : vector<8x512xbf16>, vector<512x128xbf16>, vector<8x128xf32> -> vector<8x128xf32>
    %c0_25 = arith.constant 0 : index
    %c0_26 = arith.constant 0 : index
    %43 = vector.load %arg11[%c0_25, %c0_26] : memref<1x128xf32, #tpu.memory_space<vmem>>, vector<1x128xf32>
    %44 = vector.broadcast %43 : vector<1x128xf32> to vector<8x128xf32>
    %45 = arith.addf %42, %44 : vector<8x128xf32>
    %46 = arith.truncf %45 : vector<8x128xf32> to vector<8x128xbf16>
    %c0_27 = arith.constant 0 : index
    %c0_28 = arith.constant 0 : index
    %47 = vector.load %arg12[%c0_27, %c0_28] : memref<8x128xbf16, #tpu.memory_space<vmem>>, vector<8x128xbf16>
    tpu.vector_store %arg12[%c0_27, %c0_28], %46 {strides = array<i32>} : memref<8x128xbf16, #tpu.memory_space<vmem>>, vector<8x128xbf16>,
    return
  }
  func.func @transform_0(%arg0: i32) -> (i32, i32) {
    %c0_i32 = arith.constant 0 : i32
    %c0_i32_0 = arith.constant 0 : i32
    return %arg0, %c0_i32 : i32, i32
  }
  func.func @transform_1(%arg0: i32) -> (i32, i32) {
    %c0_i32 = arith.constant 0 : i32
    %c0_i32_0 = arith.constant 0 : i32
    %c0_i32_1 = arith.constant 0 : i32
    return %c0_i32, %c0_i32_0 : i32, i32
  }
  func.func @transform_2(%arg0: i32) -> (i32, i32) {
    %c0_i32 = arith.constant 0 : i32
    %c0_i32_0 = arith.constant 0 : i32
    %c0_i32_1 = arith.constant 0 : i32
    return %c0_i32, %c0_i32_0 : i32, i32
  }
  func.func @transform_3(%arg0: i32) -> (i32, i32) {
    %c0_i32 = arith.constant 0 : i32
    %c0_i32_0 = arith.constant 0 : i32
    %c0_i32_1 = arith.constant 0 : i32
    return %c0_i32, %c0_i32_0 : i32, i32
  }
  func.func @transform_4(%arg0: i32) -> (i32, i32) {
    %c0_i32 = arith.constant 0 : i32
    %c0_i32_0 = arith.constant 0 : i32
    %c0_i32_1 = arith.constant 0 : i32
    return %c0_i32, %c0_i32_0 : i32, i32
  }
  func.func @transform_5(%arg0: i32) -> (i32, i32) {
    %c0_i32 = arith.constant 0 : i32
    %c0_i32_0 = arith.constant 0 : i32
    %c0_i32_1 = arith.constant 0 : i32
    return %c0_i32, %c0_i32_0 : i32, i32
  }
  func.func @transform_6(%arg0: i32) -> (i32, i32) {
    %c0_i32 = arith.constant 0 : i32
    %c0_i32_0 = arith.constant 0 : i32
    %c0_i32_1 = arith.constant 0 : i32
    return %c0_i32, %c0_i32_0 : i32, i32
  }
  func.func @transform_7(%arg0: i32) -> (i32, i32) {
    %c0_i32 = arith.constant 0 : i32
    %c0_i32_0 = arith.constant 0 : i32
    %c0_i32_1 = arith.constant 0 : i32
    return %c0_i32, %c0_i32_0 : i32, i32
  }
  func.func @transform_8(%arg0: i32) -> (i32, i32) {
    %c0_i32 = arith.constant 0 : i32
    %c0_i32_0 = arith.constant 0 : i32
    %c0_i32_1 = arith.constant 0 : i32
    return %c0_i32, %c0_i32_0 : i32, i32
  }
  func.func @transform_9(%arg0: i32) -> (i32, i32) {
    %c0_i32 = arith.constant 0 : i32
    %c0_i32_0 = arith.constant 0 : i32
    %c0_i32_1 = arith.constant 0 : i32
    return %c0_i32, %c0_i32_0 : i32, i32
  }
  func.func @transform_10(%arg0: i32) -> (i32, i32) {
    %c0_i32 = arith.constant 0 : i32
    %c0_i32_0 = arith.constant 0 : i32
    %c0_i32_1 = arith.constant 0 : i32
    return %c0_i32, %c0_i32_0 : i32, i32
  }
  func.func @transform_11(%arg0: i32) -> (i32, i32) {
    %c0_i32 = arith.constant 0 : i32
    %c0_i32_0 = arith.constant 0 : i32
    return %arg0, %c0_i32 : i32, i32
  }
}

</mosaic_0001>

<bundles_post_ra>
// kernel: tpu_custom_call.1
= control target key start
LH: loop header
LB: loop body
LE: loop exit
PB: predicated region body
PF: predicated region fallthrough
CT: control target
= control target key end

     0   :  { %16 = vsyncpa [#allocation3], 0  ;;  %s5023_s0 = inlined_call_operand.vmem [shape: f32[8,2], index: 0, kind: input, shape index: {}]   ;;  %s5024_s1 = inlined_call_operand.vmem [shape: bf16[2,512], index: 1, kind: input, shape index: {}]   ;;  %s5025_s2 = inlined_call_operand.vmem [shape: bf16[1,512], index: 2, kind: input, shape index: {}]   ;;  %s5026_s3 = inlined_call_operand.hbm [shape: bf16[512,512], index: 3, kind: input, shape index: {}]   ;;  %s5027_s4 = inlined_call_operand.vmem [shape: bf16[1,512], index: 4, kind: input, shape index: {}]   ;;  %s5028_s5 = inlined_call_operand.hbm [shape: bf16[512,512], index: 5, kind: input, shape index: {}]   ;;  %s5029_s6 = inlined_call_operand.vmem [shape: bf16[1,512], index: 6, kind: input, shape index: {}]   ;;  %s5030_s7 = inlined_call_operand.hbm [shape: bf16[512,512], index: 7, kind: input, shape index: {}]   ;;  %s5031_s8 = inlined_call_operand.vmem [shape: bf16[1,512], index: 8, kind: input, shape index: {}]   ;;  %s5032_s9 = inlined_call_operand.hbm [shape: bf16[512,128], index: 9, kind: input, shape index: {}]   ;;  %s5033_s10 = inlined_call_operand.vmem [shape: f32[1,128], index: 10, kind: input, shape index: {}]   ;;  %s5034_s11 = inlined_call_operand.hbm [shape: bf16[8,128], index: 11, kind: output, shape index: {}]  }
   0x1   :  { %17 = vsyncpa [#allocation6], 0 }
   0x2   :  { %18 = vsyncpa [#allocation9], 0 }
   0x3   :  { %19 = vsyncpa [#allocation4], 0  ;;  %s4810_s17 = smov [#allocation5]   ;;  %s4811_s19 = smov [#allocation2]  }
   0x4   :  { %s45_s18 = sshll.u32 %s4810_s17, 4  ;;  %s31_s20 = sshll.u32 %s4811_s19, 4  ;;  %s46_s18 = int_to_ptr.vmem [resolvable:$true] %s45_s18  ;;  %s32_s20 = int_to_ptr.vmem [resolvable:$true] %s31_s20 }
   0x5   :  { %s4710_s21 = scalar_lea.vmem %s46_s18, 16384  ;;  %p4715_p1 = scmp.lt.s32.totalorder %s46_s18, %s46_s18 }
   0x6   :  { %p4711_p0 = scmp.ne.s32.totalorder %s46_s18, %s4710_s21  ;;  %p4716_p2 = scmp.lt.s32.totalorder %s4710_s21, %s4710_s21 }
   0x8   :  { %p4717_p3 = por %p4716_p2, %p4715_p1 }
   0xa   :  { %p4718_p4 = pnand %p4717_p3, %p4711_p0 }
   0xc   :  { %4721 = shalt.err (!%p4718_p4)
}
   0xd   :  { %s4812_s22 = smov 256   ;;  %s4813_s23 = smov 16  }
   0xe   :  { %51 = dma.hbm_to_vmem [thread:$0]  %s5028_s5, 16384, %s46_s18, [#allocation6], %s4812_s22, %s4812_s22, %s4813_s23  }
   0xf   :  { %s4730_s26 = scalar_lea.vmem %s32_s20, 16384  ;;  %p4735_p6 = scmp.lt.s32.totalorder %s32_s20, %s32_s20 }
  0x10   :  { %p4731_p5 = scmp.ne.s32.totalorder %s32_s20, %s4730_s26  ;;  %p4736_p7 = scmp.lt.s32.totalorder %s4730_s26, %s4730_s26 }
  0x12   :  { %p4737_p8 = por %p4736_p7, %p4735_p6 }
  0x14   :  { %p4738_p9 = pnand %p4737_p8, %p4731_p5 }
  0x16   :  { %4741 = shalt.err (!%p4738_p9)
}
  0x17   :  { %37 = dma.hbm_to_vmem [thread:$0]  %s5026_s3, 16384, %s32_s20, [#allocation3], %s4812_s22, %s4812_s22, %s4813_s23  }
  0x18   :  { %s4814_s29 = smov [#allocation7]   ;;  %s4815_s12 = smov [#allocation8]  }
  0x19   :  { %s59_s30 = sshll.u32 %s4814_s29, 4  ;;  %s73_s13 = sshll.u32 %s4815_s12, 4  ;;  %s60_s30 = int_to_ptr.vmem [resolvable:$true] %s59_s30  ;;  %s74_s13 = int_to_ptr.vmem [resolvable:$true] %s73_s13 }
  0x1a   :  { %s4750_s14 = scalar_lea.vmem %s60_s30, 16384  ;;  %p4755_p11 = scmp.lt.s32.totalorder %s60_s30, %s60_s30 }
  0x1b   :  { %p4751_p10 = scmp.ne.s32.totalorder %s60_s30, %s4750_s14  ;;  %p4756_p12 = scmp.lt.s32.totalorder %s4750_s14, %s4750_s14 }
  0x1d   :  { %p4757_p13 = por %p4756_p12, %p4755_p11 }
  0x1f   :  { %p4758_p0 = pnand %p4757_p13, %p4751_p10 }
  0x21   :  { %4761 = shalt.err (!%p4758_p0)
}
  0x22   :  { %65 = dma.hbm_to_vmem [thread:$0]  %s5030_s7, 16384, %s60_s30, [#allocation6], %s4812_s22, %s4812_s22, %s4813_s23  }
  0x23   :  { %s4770_s16 = scalar_lea.vmem %s74_s13, 4096  ;;  %p4775_p2 = scmp.lt.s32.totalorder %s74_s13, %s74_s13 }
  0x24   :  { %p4771_p1 = scmp.ne.s32.totalorder %s74_s13, %s4770_s16  ;;  %p4776_p3 = scmp.lt.s32.totalorder %s4770_s16, %s4770_s16 }
  0x26   :  { %p4777_p4 = por %p4776_p3, %p4775_p2 }
  0x28   :  { %p4778_p5 = pnand %p4777_p4, %p4771_p1 }
  0x2a   :  { %4781 = shalt.err (!%p4778_p5)
}
  0x2b   :  { %s4816_s3 = smov 64   ;;  %s4817_s17 = smov 4  }
  0x2c   :  { %79 = dma.hbm_to_vmem [thread:$0]  %s5032_s9, 4096, %s74_s13, [#allocation9], %s4816_s3, %s4816_s3, %s4817_s17  }
  0x2d   :  { %4802 = dma.done.wait [#allocation3], 16384  }
  0x2e   :  { %4803 = vsyncadd [#allocation3], 4294950912 }
  0x2f   :  { %4804 = dma.done.wait [#allocation6], 32768  }
  0x30   :  { %4805 = vsyncadd [#allocation6], 4294934528 }
  0x31   :  { %4806 = dma.done.wait [#allocation9], 4096  }
  0x32   :  { %4807 = vsyncadd [#allocation9], 4294963200  ;;  %v4818_v0 = vmov 0   ;;  %v95_v1 = vld [vmem:[%s5023_s0] sm:$0xff]  ;;  %v4094_v3 = vld [vmem:[#allocation2 + $0xe4] ss:$16 sps:$4 sm:$0xff]  }
  0x33   :  { %4092 = vset.pattern.permute.xlu0 %v4818_v0  ;;  %v96_v2 = vpack.c.bf16 %v95_v1, %v95_v1  ;;  %v4096_v4 = vld [vmem:[#allocation2 + $0x2e4] ss:$16 sps:$4 sm:$0xff]   ;;  %v4098_v5 = vld [vmem:[#allocation2 + $0xe0] ss:$16 sps:$4 sm:$0xff]   ;;  %1026 = vmatprep.subr.bf16.mxu0 %v4094_v3  ;;  %v4819_v12 = vmov 1   ;;  %s4821_s26 = smov [#allocation10]  }
  0x34   :  { %v4099_v6 = vld [vmem:[#allocation2 + $0x2e0] ss:$16 sps:$4 sm:$0xff]   ;;  %v4100_v7 = vld [vmem:[#allocation2 + $0xc4] ss:$16 sps:$4 sm:$0xff]   ;;  %1067 = vmatprep.subr.bf16.mxu1 %v4096_v4  ;;  %1027 = vmatpush1.bf16.msra.mxu0 %v4098_v5  ;;  %v4192_v5 = vld [vmem:[#allocation2 + $0xec] ss:$16 sps:$4 sm:$0xff]  }
  0x35   :  { %100 = vperm.xlu0 %4092, %v96_v2   ;;  %v4102_v8 = vld [vmem:[#allocation2 + $0x2c4] ss:$16 sps:$4 sm:$0xff]   ;;  %1068 = vmatpush1.bf16.msra.mxu1 %v4099_v6  ;;  %v4104_v9 = vld [vmem:[#allocation2 + $0xc0] ss:$16 sps:$4 sm:$0xff]   ;;  %v4195_v6 = vld [vmem:[#allocation2 + $0x2ec] ss:$16 sps:$4 sm:$0xff]  }
  0x36   :  { %1028 = vmatprep.subr.bf16.mxu0 %v4100_v7  ;;  %v4105_v10 = vld [vmem:[#allocation2 + $0x2c0] ss:$16 sps:$4 sm:$0xff]   ;;  %1069 = vmatprep.subr.bf16.mxu1 %v4102_v8  ;;  %v4106_v11 = vld [vmem:[#allocation2 + $0xa4] ss:$16 sps:$4 sm:$0xff]   ;;  %v4820_v7 = vmov 1966171168  }
  0x37   :  { %v4108_v13 = vld [vmem:[#allocation2 + $0x2a4] ss:$16 sps:$4 sm:$0xff]   ;;  %v4110_v14 = vld [vmem:[#allocation2 + $0xa0] ss:$16 sps:$4 sm:$0xff]   ;;  %v113_v8 = vunpack.c.l.s4 %v4820_v7  ;;  %s3603_s27 = sshll.u32 %s4821_s26, 4  ;;  %s3604_s27 = int_to_ptr.vmem [resolvable:$true] %s3603_s27 }
  0x38   :  { %1029 = vmatpush1.bf16.msra.mxu0 %v4104_v9  ;;  %v4111_v15 = vld [vmem:[#allocation2 + $0x2a0] ss:$16 sps:$4 sm:$0xff]   ;;  %v4112_v16 = vld [vmem:[#allocation2 + $0x84] ss:$16 sps:$4 sm:$0xff]   ;;  %v115_v9 = vlaneseq  ;;  %s4782_s28 = scalar_lea.vmem %s3604_s27, 64  ;;  %p4787_p7 = scmp.lt.s32.totalorder %s3604_s27, %s3604_s27 }
  0x39   :  { %4093 = vset.pattern.permute.xlu0 %v4819_v12  ;;  %1070 = vmatpush1.bf16.msra.mxu1 %v4105_v10  ;;  %v4114_v17 = vld [vmem:[#allocation2 + $0x284] ss:$16 sps:$4 sm:$0xff]   ;;  %v4116_v18 = vld [vmem:[#allocation2 + $0x80] ss:$16 sps:$4 sm:$0xff]   ;;  %p4783_p6 = scmp.ne.s32.totalorder %s3604_s27, %s4782_s28  ;;  %p4788_p8 = scmp.lt.s32.totalorder %s4782_s28, %s4782_s28 }
  0x3a   :  { %161 = vperm.xlu0 %4093, %v96_v2   ;;  %1030 = vmatprep.subr.bf16.mxu0 %v4106_v11  ;;  %v4117_v19 = vld [vmem:[#allocation2 + $0x280] ss:$16 sps:$4 sm:$0xff]   ;;  %v4118_v20 = vld [vmem:[#allocation2 + $0x64] ss:$16 sps:$4 sm:$0xff]   ;;  %v114_v11 = vunpack.c.0.s8 %v113_v8  ;;  %v116_v12 = vshrl.u32 %v115_v9, 7 }
  0x3b   :  { %1071 = vmatprep.subr.bf16.mxu1 %v4108_v13  ;;  %v4120_v21 = vld [vmem:[#allocation2 + $0x264] ss:$16 sps:$4 sm:$0xff]   ;;  %v4122_v22 = vld [vmem:[#allocation2 + $0x60] ss:$16 sps:$4 sm:$0xff]   ;;  %p4789_p9 = por %p4788_p8, %p4787_p7 }
  0x3c   :  { %1031 = vmatpush1.bf16.msra.mxu0 %v4110_v14  ;;  %v4123_v23 = vld [vmem:[#allocation2 + $0x260] ss:$16 sps:$4 sm:$0xff]   ;;  %v4124_v24 = vld [vmem:[#allocation2 + $0x44] ss:$16 sps:$4 sm:$0xff]   ;;  %v4904_v14 = vsub.s32 %v114_v11, %v116_v12  ;;  %v4198_v11 = vld [vmem:[#allocation2 + $0xcc] ss:$16 sps:$4 sm:$0xff]  }
  0x3d   :  { %1072 = vmatpush1.bf16.msra.mxu1 %v4111_v15  ;;  %1032 = vmatprep.subr.bf16.mxu0 %v4112_v16  ;;  %v4126_v25 = vld [vmem:[#allocation2 + $0x244] ss:$16 sps:$4 sm:$0xff]   ;;  %v4128_v26 = vld [vmem:[#allocation2 + $0x40] ss:$16 sps:$4 sm:$0xff]   ;;  %p4790_p10 = pnand %p4789_p9, %p4783_p6 }
  0x3e   :  { %1073 = vmatprep.subr.bf16.mxu1 %v4114_v17  ;;  %v4129_v27 = vld [vmem:[#allocation2 + $0x240] ss:$16 sps:$4 sm:$0xff]   ;;  %v4130_v28 = vld [vmem:[#allocation2 + $0x24] ss:$16 sps:$4 sm:$0xff]  }
  0x3f   :  { %v4132_v29 = vld [vmem:[#allocation2 + $0x224] ss:$16 sps:$4 sm:$0xff]   ;;  %v4134_v30 = vld [vmem:[#allocation2 + $0x20] ss:$16 sps:$4 sm:$0xff]  }
  0x40   :  { %1033 = vmatpush1.bf16.msra.mxu0 %v4116_v18  ;;  %v4135_v31 = vld [vmem:[#allocation2 + $0x220] ss:$16 sps:$4 sm:$0xff]   ;;  %v4136_v32 = vld [vmem:[#allocation2 + $0x4] ss:$16 sps:$4 sm:$0xff]  }
  0x41   :  { %1074 = vmatpush1.bf16.msra.mxu1 %v4117_v19  ;;  %1034 = vmatprep.subr.bf16.mxu0 %v4118_v20  ;;  %v4138_v33 = vld [vmem:[#allocation2 + $0x204] ss:$16 sps:$4 sm:$0xff]   ;;  %v4140_v34 = vld [vmem:[#allocation2] ss:$16 sps:$4 sm:$0xff]  }
  0x42   :  { %1075 = vmatprep.subr.bf16.mxu1 %v4120_v21  ;;  %v4141_v35 = vld [vmem:[#allocation2 + $0x200] ss:$16 sps:$4 sm:$0xff]   ;;  %v4142_v36 = vld [vmem:[#allocation2 + $0x1e4] ss:$16 sps:$4 sm:$0xff]  }
  0x43   :  { %v4144_v37 = vld [vmem:[#allocation2 + $0x3e4] ss:$16 sps:$4 sm:$0xff]   ;;  %v4146_v38 = vld [vmem:[#allocation2 + $0x1e0] ss:$16 sps:$4 sm:$0xff]  }
  0x44   :  { %1035 = vmatpush1.bf16.msra.mxu0 %v4122_v22  ;;  %v4147_v39 = vld [vmem:[#allocation2 + $0x3e0] ss:$16 sps:$4 sm:$0xff]   ;;  %v4148_v40 = vld [vmem:[#allocation2 + $0x1c4] ss:$16 sps:$4 sm:$0xff]  }
  0x45   :  { %1076 = vmatpush1.bf16.msra.mxu1 %v4123_v23  ;;  %1036 = vmatprep.subr.bf16.mxu0 %v4124_v24  ;;  %v4150_v41 = vld [vmem:[#allocation2 + $0x3c4] ss:$16 sps:$4 sm:$0xff]   ;;  %v4152_v42 = vld [vmem:[#allocation2 + $0x1c0] ss:$16 sps:$4 sm:$0xff]  }
  0x46   :  { %1077 = vmatprep.subr.bf16.mxu1 %v4126_v25  ;;  %v4153_v43 = vld [vmem:[#allocation2 + $0x3c0] ss:$16 sps:$4 sm:$0xff]   ;;  %v4154_v44 = vld [vmem:[#allocation2 + $0x1a4] ss:$16 sps:$4 sm:$0xff]  }
  0x47   :  { %v4156_v45 = vld [vmem:[#allocation2 + $0x3a4] ss:$16 sps:$4 sm:$0xff]   ;;  %v4158_v46 = vld [vmem:[#allocation2 + $0x1a0] ss:$16 sps:$4 sm:$0xff]  }
  0x48   :  { %1037 = vmatpush1.bf16.msra.mxu0 %v4128_v26  ;;  %v4159_v47 = vld [vmem:[#allocation2 + $0x3a0] ss:$16 sps:$4 sm:$0xff]   ;;  %v4160_v48 = vld [vmem:[#allocation2 + $0x184] ss:$16 sps:$4 sm:$0xff]  }
  0x49   :  { %1078 = vmatpush1.bf16.msra.mxu1 %v4129_v27  ;;  %1038 = vmatprep.subr.bf16.mxu0 %v4130_v28  ;;  %v4162_v49 = vld [vmem:[#allocation2 + $0x384] ss:$16 sps:$4 sm:$0xff]   ;;  %v4164_v50 = vld [vmem:[#allocation2 + $0x180] ss:$16 sps:$4 sm:$0xff]   ;;  %v4910_v27 = vsub.s32 0, %v116_v12 }
  0x4a   :  { %1079 = vmatprep.subr.bf16.mxu1 %v4132_v29  ;;  %v4165_v51 = vld [vmem:[#allocation2 + $0x380] ss:$16 sps:$4 sm:$0xff]   ;;  %v4166_v52 = vld [vmem:[#allocation2 + $0x164] ss:$16 sps:$4 sm:$0xff]   ;;  %v4201_v12 = vld [vmem:[#allocation2 + $0x2cc] ss:$16 sps:$4 sm:$0xff]  }
  0x4b   :  { %v4168_v53 = vld [vmem:[#allocation2 + $0x364] ss:$16 sps:$4 sm:$0xff]   ;;  %v4170_v54 = vld [vmem:[#allocation2 + $0x160] ss:$16 sps:$4 sm:$0xff]  }
  0x4c   :  { %1039 = vmatpush1.bf16.msra.mxu0 %v4134_v30  ;;  %v4171_v55 = vld [vmem:[#allocation2 + $0x360] ss:$16 sps:$4 sm:$0xff]   ;;  %v4172_v56 = vld [vmem:[#allocation2 + $0x144] ss:$16 sps:$4 sm:$0xff]  }
  0x4d   :  { %1080 = vmatpush1.bf16.msra.mxu1 %v4135_v31  ;;  %1040 = vmatprep.subr.bf16.mxu0 %v4136_v32  ;;  %v4174_v57 = vld [vmem:[#allocation2 + $0x344] ss:$16 sps:$4 sm:$0xff]   ;;  %v4176_v58 = vld [vmem:[#allocation2 + $0x140] ss:$16 sps:$4 sm:$0xff]  }
  0x4e   :  { %1081 = vmatprep.subr.bf16.mxu1 %v4138_v33  ;;  %v4177_v59 = vld [vmem:[#allocation2 + $0x340] ss:$16 sps:$4 sm:$0xff]   ;;  %v4178_v60 = vld [vmem:[#allocation2 + $0x124] ss:$16 sps:$4 sm:$0xff]  }
  0x4f   :  { %v4180_v61 = vld [vmem:[#allocation2 + $0x324] ss:$16 sps:$4 sm:$0xff]   ;;  %v4182_v62 = vld [vmem:[#allocation2 + $0x120] ss:$16 sps:$4 sm:$0xff]  }
  0x50   :  { %1041 = vmatpush1.bf16.msra.mxu0 %v4140_v34  ;;  %v4183_v63 = vld [vmem:[#allocation2 + $0x320] ss:$16 sps:$4 sm:$0xff]   ;;  %v4184_v1 = vld [vmem:[#allocation2 + $0x104] ss:$16 sps:$4 sm:$0xff]  }
  0x51   :  { %1082 = vmatpush1.bf16.msra.mxu1 %v4141_v35  ;;  %1042 = vmatprep.subr.bf16.mxu0 %v4142_v36  ;;  %v4186_v2 = vld [vmem:[#allocation2 + $0x304] ss:$16 sps:$4 sm:$0xff]   ;;  %v4188_v3 = vld [vmem:[#allocation2 + $0x100] ss:$16 sps:$4 sm:$0xff]  }
  0x52   :  { %1083 = vmatprep.subr.bf16.mxu1 %v4144_v37  ;;  %v4189_v4 = vld [vmem:[#allocation2 + $0x300] ss:$16 sps:$4 sm:$0xff]   ;;  %v3614_v10 = vld.sshfl [vmem:[%s5024_s1] sm:$0x33 pattern:$0x75316420] }
  0x53   :  { %v3615_v13 = vld.sshfl [vmem:[%s5025_s2] sm:$0x33 pattern:$0x75316420]  ;;  %v111_v15 = vcombine.high %v3614_v10, %v3614_v10  ;;  %v118_v16 = vrot.slane %v3614_v10, %v4904_v14 }
  0x54   :  { %1043 = vmatpush2.bf16.msra.mxu0 %v4146_v38  ;;  %v209_v18 = vcombine.high %v3615_v13, %v3615_v13  ;;  %v216_v22 = vrot.slane %v3615_v13, %v4904_v14  ;;  %v4196_v13 = vld [vmem:[#allocation2 + $0xc8] ss:$16 sps:$4 sm:$0xff]  }
  0x55   :  { %1084 = vmatpush2.bf16.msra.mxu1 %v4147_v39  ;;  %1044 = vmatprep.subr.bf16.mxu0 %v4148_v40  ;;  %v125_v17 = vrot.slane %v111_v15, %v4904_v14  ;;  %v126_v19 = vcombine.high %v118_v16, %v118_v16  ;;  %v164_v23 = vshrl.u32 %v118_v16, 16  ;;  %v129_v30 = vpack.i.b16 %v118_v16, %v118_v16  ;;  %v4199_v15 = vld [vmem:[#allocation2 + $0x2c8] ss:$16 sps:$4 sm:$0xff]   ;;  %v4204_v16 = vld [vmem:[#allocation2 + $0xac] ss:$16 sps:$4 sm:$0xff]  }
  0x56   :  { %1085 = vmatprep.subr.bf16.mxu1 %v4150_v41  ;;  %v223_v21 = vrot.slane %v209_v18, %v4904_v14  ;;  %v224_v29 = vcombine.high %v216_v22, %v216_v22  ;;  %v227_v41 = vpack.i.b16 %v216_v22, %v216_v22  ;;  %v4202_v18 = vld [vmem:[#allocation2 + $0xa8] ss:$16 sps:$4 sm:$0xff]  }
  0x57   :  { %v127_v20 = vcombine.high %v125_v17, %v125_v17  ;;  %v171_v24 = vshrl.u32 %v125_v17, 16  ;;  %v178_v25 = vshrl.u32 %v126_v19, 16  ;;  %v143_v31 = vpack.i.b16 %v126_v19, %v126_v19  ;;  %v4205_v19 = vld [vmem:[#allocation2 + $0x2a8] ss:$16 sps:$4 sm:$0xff]  }
  0x58   :  { %1045 = vmatpush2.bf16.msra.mxu0 %v4152_v42  ;;  %v225_v28 = vcombine.high %v223_v21, %v223_v21  ;;  %v136_v32 = vpack.i.b16 %v125_v17, %v125_v17  ;;  %v165_v34 = vpack.i.b16 %v164_v23, %v164_v23  ;;  %v234_v39 = vpack.i.b16 %v223_v21, %v223_v21  ;;  %v4207_v17 = vld [vmem:[#allocation2 + $0x2ac] ss:$16 sps:$4 sm:$0xff]   ;;  %v4208_v22 = vld [vmem:[#allocation2 + $0x88] ss:$16 sps:$4 sm:$0xff]  }
  0x59   :  { %1086 = vmatpush2.bf16.msra.mxu1 %v4153_v43  ;;  %1046 = vmatprep.subr.bf16.mxu0 %v4154_v44  ;;  %v185_v26 = vshrl.u32 %v127_v20, 16  ;;  %v150_v33 = vpack.i.b16 %v127_v20, %v127_v20  ;;  %v172_v35 = vpack.i.b16 %v171_v24, %v171_v24  ;;  %v179_v36 = vpack.i.b16 %v178_v25, %v178_v25  ;;  %v4210_v20 = vld [vmem:[#allocation2 + $0x8c] ss:$16 sps:$4 sm:$0xff]   ;;  %v4211_v23 = vld [vmem:[#allocation2 + $0x288] ss:$16 sps:$4 sm:$0xff]  }
  0x5a   :  { %1087 = vmatprep.subr.bf16.mxu1 %v4156_v45  ;;  %v248_v40 = vpack.i.b16 %v225_v28, %v225_v28  ;;  %v241_v42 = vpack.i.b16 %v224_v29, %v224_v29  ;;  %v134_v43 = vrot.slane %v129_v30, %v4910_v27  ;;  %v148_v44 = vrot.slane %v143_v31, %v4910_v27  ;;  %v4213_v21 = vld [vmem:[#allocation2 + $0x28c] ss:$16 sps:$4 sm:$0xff]   ;;  %v4217_v28 = vld [vmem:[#allocation2 + $0x268] ss:$16 sps:$4 sm:$0xff]  }
  0x5b   :  { %v186_v37 = vpack.i.b16 %v185_v26, %v185_v26  ;;  %v141_v45 = vrot.slane %v136_v32, %v4910_v27  ;;  %v4216_v24 = vld [vmem:[#allocation2 + $0x6c] ss:$16 sps:$4 sm:$0xff]   ;;  %v4214_v26 = vld [vmem:[#allocation2 + $0x68] ss:$16 sps:$4 sm:$0xff]  }
  0x5c   :  { %1047 = vmatpush2.bf16.msra.mxu0 %v4158_v46  ;;  %v155_v46 = vrot.slane %v150_v33, %v4910_v27  ;;  %v4219_v25 = vld [vmem:[#allocation2 + $0x26c] ss:$16 sps:$4 sm:$0xff]   ;;  %v4220_v31 = vld [vmem:[#allocation2 + $0x48] ss:$16 sps:$4 sm:$0xff]  }
  0x5d   :  { %1088 = vmatpush2.bf16.msra.mxu1 %v4159_v47  ;;  %1048 = vmatprep.subr.bf16.mxu0 %v4160_v48  ;;  %v170_v47 = vrot.slane %v165_v34, %v4910_v27  ;;  %v177_v48 = vrot.slane %v172_v35, %v4910_v27  ;;  %v4222_v29 = vld [vmem:[#allocation2 + $0x4c] ss:$16 sps:$4 sm:$0xff]   ;;  %v4223_v32 = vld [vmem:[#allocation2 + $0x248] ss:$16 sps:$4 sm:$0xff]  }
  0x5e   :  { %1089 = vmatprep.subr.bf16.mxu1 %v4162_v49  ;;  %v184_v49 = vrot.slane %v179_v36, %v4910_v27  ;;  %v4225_v30 = vld [vmem:[#allocation2 + $0x24c] ss:$16 sps:$4 sm:$0xff]   ;;  %v4226_v35 = vld [vmem:[#allocation2 + $0x28] ss:$16 sps:$4 sm:$0xff]  }
  0x5f   :  { %v4228_v33 = vld [vmem:[#allocation2 + $0x2c] ss:$16 sps:$4 sm:$0xff]   ;;  %v4229_v36 = vld [vmem:[#allocation2 + $0x228] ss:$16 sps:$4 sm:$0xff]  }
  0x60   :  { %1049 = vmatpush2.bf16.msra.mxu0 %v4164_v50  ;;  %v191_v50 = vrot.slane %v186_v37, %v4910_v27  ;;  %v4231_v34 = vld [vmem:[#allocation2 + $0x22c] ss:$16 sps:$4 sm:$0xff]  }
  0x61   :  { %1090 = vmatpush2.bf16.msra.mxu1 %v4165_v51  ;;  %1050 = vmatprep.subr.bf16.mxu0 %v4166_v52  ;;  %v239_v51 = vrot.slane %v234_v39, %v4910_v27  ;;  %v253_v52 = vrot.slane %v248_v40, %v4910_v27  ;;  %v4234_v37 = vld [vmem:[#allocation2 + $0xc] ss:$16 sps:$4 sm:$0xff]   ;;  %v4232_v39 = vld [vmem:[#allocation2 + $0x8] ss:$16 sps:$4 sm:$0xff]  }
  0x62   :  { %1091 = vmatprep.subr.bf16.mxu1 %v4168_v53  ;;  %v232_v53 = vrot.slane %v227_v41, %v4910_v27  ;;  %v4235_v40 = vld [vmem:[#allocation2 + $0x208] ss:$16 sps:$4 sm:$0xff]   ;;  %v4240_v41 = vld [vmem:[#allocation2 + $0x1ec] ss:$16 sps:$4 sm:$0xff]  }
  0x64   :  { %1051 = vmatpush2.bf16.msra.mxu0 %v4170_v54  ;;  %v246_v54 = vrot.slane %v241_v42, %v4910_v27  ;;  %v4243_v42 = vld [vmem:[#allocation2 + $0x3ec] ss:$16 sps:$4 sm:$0xff]  }
  0x65   :  { %1092 = vmatpush2.bf16.msra.mxu1 %v4171_v55  ;;  %1052 = vmatprep.subr.bf16.mxu0 %v4172_v56 }
  0x66   :  { %1093 = vmatprep.subr.bf16.mxu1 %v4174_v57 }
  0x68   :  { %1053 = vmatpush2.bf16.msra.mxu0 %v4176_v58 }
  0x69   :  { %1094 = vmatpush2.bf16.msra.mxu1 %v4177_v59  ;;  %1054 = vmatprep.subr.bf16.mxu0 %v4178_v60 }
  0x6a   :  { %1095 = vmatprep.subr.bf16.mxu1 %v4180_v61 }
  0x6c   :  { %1055 = vmatpush2.bf16.msra.mxu0 %v4182_v62 }
  0x6d   :  { %1096 = vmatpush2.bf16.msra.mxu1 %v4183_v63  ;;  %1056 = vmatprep.subr.bf16.mxu0 %v4184_v1 }
  0x6e   :  { %1097 = vmatprep.subr.bf16.mxu1 %v4186_v2 }
  0x70   :  { %1057 = vmatpush2.bf16.msra.mxu0 %v4188_v3 }
  0x71   :  { %1098 = vmatpush2.bf16.msra.mxu1 %v4189_v4  ;;  %1108 = vmatprep.subr.bf16.mxu0 %v4192_v5  ;;  %v4190_v5 = vld [vmem:[#allocation2 + $0xe8] ss:$16 sps:$4 sm:$0xff]  }
  0x72   :  { %1149 = vmatprep.subr.bf16.mxu1 %v4195_v6  ;;  %v4193_v6 = vld [vmem:[#allocation2 + $0x2e8] ss:$16 sps:$4 sm:$0xff]  }
  0xb0   :  { %v101_v38 = vpop.permute.xlu0 %100 }
  0xb1   :  { %v156_v55 = vmul.bf16 %v134_v43, %v101_v38  ;;  %v158_v56 = vmul.bf16 %v148_v44, %v101_v38  ;;  %v157_v58 = vmul.bf16 %v141_v45, %v101_v38  ;;  %v159_v59 = vmul.bf16 %v155_v46, %v101_v38  ;;  %v4237_v38 = vld [vmem:[#allocation2 + $0x20c] ss:$16 sps:$4 sm:$0xff]   ;;  %v4238_v43 = vld [vmem:[#allocation2 + $0x1e8] ss:$16 sps:$4 sm:$0xff]  }
  0xb2   :  { %v4241_v44 = vld [vmem:[#allocation2 + $0x3e8] ss:$16 sps:$4 sm:$0xff]   ;;  %v4246_v45 = vld [vmem:[#allocation2 + $0x1cc] ss:$16 sps:$4 sm:$0xff]  }
  0xb3   :  { %v4249_v46 = vld [vmem:[#allocation2 + $0x3cc] ss:$16 sps:$4 sm:$0xff]  }
  0xb5   :  { %v162_v57 = vpop.permute.xlu0 %161 }
  0xb6   :  { %v192_v60 = vmul.bf16 %v170_v47, %v162_v57  ;;  %v193_v61 = vmul.bf16 %v177_v48, %v162_v57  ;;  %v194_v62 = vmul.bf16 %v184_v49, %v162_v57  ;;  %v195_v63 = vmul.bf16 %v191_v50, %v162_v57  ;;  %v4244_v47 = vld [vmem:[#allocation2 + $0x1c8] ss:$16 sps:$4 sm:$0xff]   ;;  %v4252_v49 = vld [vmem:[#allocation2 + $0x1ac] ss:$16 sps:$4 sm:$0xff]  }
  0xb7   :  { %v4247_v48 = vld [vmem:[#allocation2 + $0x3c8] ss:$16 sps:$4 sm:$0xff]   ;;  %v4255_v50 = vld [vmem:[#allocation2 + $0x3ac] ss:$16 sps:$4 sm:$0xff]  }
  0xb8   :  { %v196_v1 = vadd.bf16 %v192_v60, %v156_v55  ;;  %v198_v2 = vadd.bf16 %v194_v62, %v158_v56  ;;  %v197_v3 = vadd.bf16 %v193_v61, %v157_v58  ;;  %v199_v4 = vadd.bf16 %v195_v63, %v159_v59  ;;  %v4256_v55 = vld [vmem:[#allocation2 + $0x188] ss:$16 sps:$4 sm:$0xff]   ;;  %v4264_v57 = vld [vmem:[#allocation2 + $0x16c] ss:$16 sps:$4 sm:$0xff]  }
  0xb9   :  { %v4259_v56 = vld [vmem:[#allocation2 + $0x388] ss:$16 sps:$4 sm:$0xff]   ;;  %v4267_v58 = vld [vmem:[#allocation2 + $0x36c] ss:$16 sps:$4 sm:$0xff]  }
  0xba   :  { %v255_v7 = vadd.bf16 %v239_v51, %v197_v3  ;;  %v257_v8 = vadd.bf16 %v253_v52, %v199_v4  ;;  %v4924_v9 = vadd.bf16 %v232_v53, %v196_v1  ;;  %v4926_v10 = vadd.bf16 %v246_v54, %v198_v2  ;;  %v4250_v51 = vld [vmem:[#allocation2 + $0x1a8] ss:$16 sps:$4 sm:$0xff]   ;;  %v4258_v53 = vld [vmem:[#allocation2 + $0x18c] ss:$16 sps:$4 sm:$0xff]  }
  0xbb   :  { %v4253_v52 = vld [vmem:[#allocation2 + $0x3a8] ss:$16 sps:$4 sm:$0xff]   ;;  %v4261_v54 = vld [vmem:[#allocation2 + $0x38c] ss:$16 sps:$4 sm:$0xff]  }
  0xbc   :  { %1058 = vmatprep.mubr.bf16.mxu0 %v255_v7  ;;  %1099 = vmatprep.mubr.bf16.mxu1 %v257_v8  ;;  %v4262_v59 = vld [vmem:[#allocation2 + $0x168] ss:$16 sps:$4 sm:$0xff]   ;;  %v4270_v61 = vld [vmem:[#allocation2 + $0x14c] ss:$16 sps:$4 sm:$0xff]  }
  0xbd   :  { %1059 = vmatmul.mubr.bf16.vlgmr.msra.gmra.mxu0 %v4924_v9  ;;  %1100 = vmatmul.mubr.bf16.vlgmr.msra.gmra.mxu1 %v4926_v10  ;;  %v4265_v60 = vld [vmem:[#allocation2 + $0x368] ss:$16 sps:$4 sm:$0xff]   ;;  %v4273_v62 = vld [vmem:[#allocation2 + $0x34c] ss:$16 sps:$4 sm:$0xff]  }
  0xbe   :  { %1109 = vmatpush1.bf16.msra.mxu0 %v4190_v5  ;;  %1150 = vmatpush1.bf16.msra.mxu1 %v4193_v6  ;;  %v4268_v63 = vld [vmem:[#allocation2 + $0x148] ss:$16 sps:$4 sm:$0xff]   ;;  %v4276_v2 = vld [vmem:[#allocation2 + $0x12c] ss:$16 sps:$4 sm:$0xff]  }
  0xbf   :  { %1140 = vmatprep.mubr.bf16.mxu0 %v255_v7  ;;  %1181 = vmatprep.mubr.bf16.mxu1 %v257_v8  ;;  %v4271_v1 = vld [vmem:[#allocation2 + $0x348] ss:$16 sps:$4 sm:$0xff]   ;;  %v4279_v3 = vld [vmem:[#allocation2 + $0x32c] ss:$16 sps:$4 sm:$0xff]  }
  0xc0   :  { %1110 = vmatprep.subr.bf16.mxu0 %v4198_v11  ;;  %1151 = vmatprep.subr.bf16.mxu1 %v4201_v12  ;;  %v4274_v4 = vld [vmem:[#allocation2 + $0x128] ss:$16 sps:$4 sm:$0xff]   ;;  %v4282_v6 = vld [vmem:[#allocation2 + $0x10c] ss:$16 sps:$4 sm:$0xff]   ;;  %v4288_v12 = vld [vmem:[#allocation5 + $0xe4] ss:$16 sps:$4 sm:$0xff]  }
  0xc1   :  { %v4277_v5 = vld [vmem:[#allocation2 + $0x328] ss:$16 sps:$4 sm:$0xff]   ;;  %v4285_v7 = vld [vmem:[#allocation2 + $0x30c] ss:$16 sps:$4 sm:$0xff]  }
  0xc2   :  { %1111 = vmatpush1.bf16.msra.mxu0 %v4196_v13  ;;  %1152 = vmatpush1.bf16.msra.mxu1 %v4199_v15  ;;  %v4280_v8 = vld [vmem:[#allocation2 + $0x108] ss:$16 sps:$4 sm:$0xff]   ;;  %v4286_v13 = vld [vmem:[#allocation5 + $0xe0] ss:$16 sps:$4 sm:$0xff]   ;;  %v4291_v15 = vld [vmem:[#allocation5 + $0xc4] ss:$16 sps:$4 sm:$0xff]  }
  0xc3   :  { %1112 = vmatprep.subr.bf16.mxu0 %v4204_v16  ;;  %1153 = vmatprep.subr.bf16.mxu1 %v4207_v17  ;;  %v4283_v11 = vld [vmem:[#allocation2 + $0x308] ss:$16 sps:$4 sm:$0xff]   ;;  %v4289_v16 = vld [vmem:[#allocation5 + $0xc0] ss:$16 sps:$4 sm:$0xff]   ;;  %v4294_v17 = vld [vmem:[#allocation5 + $0xa4] ss:$16 sps:$4 sm:$0xff]  }
  0xc6   :  { %1113 = vmatpush1.bf16.msra.mxu0 %v4202_v18  ;;  %1154 = vmatpush1.bf16.msra.mxu1 %v4205_v19  ;;  %v4292_v18 = vld [vmem:[#allocation5 + $0xa0] ss:$16 sps:$4 sm:$0xff]   ;;  %v4297_v19 = vld [vmem:[#allocation5 + $0x84] ss:$16 sps:$4 sm:$0xff]  }
  0xc7   :  { %1114 = vmatprep.subr.bf16.mxu0 %v4210_v20  ;;  %1155 = vmatprep.subr.bf16.mxu1 %v4213_v21  ;;  %v4334_v20 = vld [vmem:[#allocation5 + $0x2e0] ss:$16 sps:$4 sm:$0xff]   ;;  %v4336_v21 = vld [vmem:[#allocation5 + $0x2e4] ss:$16 sps:$4 sm:$0xff]  }
  0xca   :  { %1115 = vmatpush1.bf16.msra.mxu0 %v4208_v22  ;;  %1156 = vmatpush1.bf16.msra.mxu1 %v4211_v23  ;;  %v4295_v22 = vld [vmem:[#allocation5 + $0x80] ss:$16 sps:$4 sm:$0xff]   ;;  %v4300_v23 = vld [vmem:[#allocation5 + $0x64] ss:$16 sps:$4 sm:$0xff]  }
  0xcb   :  { %1116 = vmatprep.subr.bf16.mxu0 %v4216_v24  ;;  %1157 = vmatprep.subr.bf16.mxu1 %v4219_v25  ;;  %v4340_v24 = vld [vmem:[#allocation5 + $0x2c0] ss:$16 sps:$4 sm:$0xff]   ;;  %v4303_v25 = vld [vmem:[#allocation5 + $0x44] ss:$16 sps:$4 sm:$0xff]  }
  0xce   :  { %1117 = vmatpush1.bf16.msra.mxu0 %v4214_v26  ;;  %1158 = vmatpush1.bf16.msra.mxu1 %v4217_v28  ;;  %v4301_v26 = vld [vmem:[#allocation5 + $0x40] ss:$16 sps:$4 sm:$0xff]  }
  0xcf   :  { %1118 = vmatprep.subr.bf16.mxu0 %v4222_v29  ;;  %1159 = vmatprep.subr.bf16.mxu1 %v4225_v30  ;;  %v4346_v28 = vld [vmem:[#allocation5 + $0x2a0] ss:$16 sps:$4 sm:$0xff]   ;;  %v4348_v29 = vld [vmem:[#allocation5 + $0x2a4] ss:$16 sps:$4 sm:$0xff]  }
  0xd0   :  { %v4306_v30 = vld [vmem:[#allocation5 + $0x24] ss:$16 sps:$4 sm:$0xff]  }
  0xd2   :  { %1119 = vmatpush1.bf16.msra.mxu0 %v4220_v31  ;;  %1160 = vmatpush1.bf16.msra.mxu1 %v4223_v32  ;;  %v4304_v31 = vld [vmem:[#allocation5 + $0x20] ss:$16 sps:$4 sm:$0xff]  }
  0xd3   :  { %1120 = vmatprep.subr.bf16.mxu0 %v4228_v33  ;;  %1161 = vmatprep.subr.bf16.mxu1 %v4231_v34  ;;  %v4352_v32 = vld [vmem:[#allocation5 + $0x280] ss:$16 sps:$4 sm:$0xff]   ;;  %v4354_v33 = vld [vmem:[#allocation5 + $0x284] ss:$16 sps:$4 sm:$0xff]  }
  0xd4   :  { %v4309_v34 = vld [vmem:[#allocation5 + $0x4] ss:$16 sps:$4 sm:$0xff]  }
  0xd6   :  { %1121 = vmatpush1.bf16.msra.mxu0 %v4226_v35  ;;  %1162 = vmatpush1.bf16.msra.mxu1 %v4229_v36  ;;  %v4307_v35 = vld [vmem:[#allocation5] ss:$16 sps:$4 sm:$0xff]  }
  0xd7   :  { %1122 = vmatprep.subr.bf16.mxu0 %v4234_v37  ;;  %1163 = vmatprep.subr.bf16.mxu1 %v4237_v38  ;;  %v4358_v36 = vld [vmem:[#allocation5 + $0x260] ss:$16 sps:$4 sm:$0xff]   ;;  %v4360_v37 = vld [vmem:[#allocation5 + $0x264] ss:$16 sps:$4 sm:$0xff]  }
  0xd8   :  { %v4312_v38 = vld [vmem:[#allocation5 + $0x1e4] ss:$16 sps:$4 sm:$0xff]  }
  0xda   :  { %1123 = vmatpush1.bf16.msra.mxu0 %v4232_v39  ;;  %1164 = vmatpush1.bf16.msra.mxu1 %v4235_v40  ;;  %v4310_v39 = vld [vmem:[#allocation5 + $0x1e0] ss:$16 sps:$4 sm:$0xff]  }
  0xdb   :  { %1124 = vmatprep.subr.bf16.mxu0 %v4240_v41  ;;  %1165 = vmatprep.subr.bf16.mxu1 %v4243_v42  ;;  %v4364_v40 = vld [vmem:[#allocation5 + $0x240] ss:$16 sps:$4 sm:$0xff]   ;;  %v4366_v41 = vld [vmem:[#allocation5 + $0x244] ss:$16 sps:$4 sm:$0xff]  }
  0xdc   :  { %v4315_v42 = vld [vmem:[#allocation5 + $0x1c4] ss:$16 sps:$4 sm:$0xff]  }
  0xde   :  { %1125 = vmatpush2.bf16.msra.mxu0 %v4238_v43  ;;  %1166 = vmatpush2.bf16.msra.mxu1 %v4241_v44  ;;  %v4313_v43 = vld [vmem:[#allocation5 + $0x1c0] ss:$16 sps:$4 sm:$0xff]  }
  0xdf   :  { %1126 = vmatprep.subr.bf16.mxu0 %v4246_v45  ;;  %1167 = vmatprep.subr.bf16.mxu1 %v4249_v46  ;;  %v4370_v44 = vld [vmem:[#allocation5 + $0x220] ss:$16 sps:$4 sm:$0xff]   ;;  %v4372_v45 = vld [vmem:[#allocation5 + $0x224] ss:$16 sps:$4 sm:$0xff]  }
  0xe0   :  { %v4318_v46 = vld [vmem:[#allocation5 + $0x1a4] ss:$16 sps:$4 sm:$0xff]  }
  0xe2   :  { %1127 = vmatpush2.bf16.msra.mxu0 %v4244_v47  ;;  %1168 = vmatpush2.bf16.msra.mxu1 %v4247_v48  ;;  %v4316_v47 = vld [vmem:[#allocation5 + $0x1a0] ss:$16 sps:$4 sm:$0xff]  }
  0xe3   :  { %1128 = vmatprep.subr.bf16.mxu0 %v4252_v49  ;;  %1169 = vmatprep.subr.bf16.mxu1 %v4255_v50  ;;  %v4376_v48 = vld [vmem:[#allocation5 + $0x200] ss:$16 sps:$4 sm:$0xff]   ;;  %v4378_v49 = vld [vmem:[#allocation5 + $0x204] ss:$16 sps:$4 sm:$0xff]  }
  0xe4   :  { %v4321_v50 = vld [vmem:[#allocation5 + $0x184] ss:$16 sps:$4 sm:$0xff]  }
  0xe6   :  { %1129 = vmatpush2.bf16.msra.mxu0 %v4250_v51  ;;  %1170 = vmatpush2.bf16.msra.mxu1 %v4253_v52  ;;  %v4319_v51 = vld [vmem:[#allocation5 + $0x180] ss:$16 sps:$4 sm:$0xff]  }
  0xe7   :  { %1130 = vmatprep.subr.bf16.mxu0 %v4258_v53  ;;  %1171 = vmatprep.subr.bf16.mxu1 %v4261_v54  ;;  %v4382_v52 = vld [vmem:[#allocation5 + $0x3e0] ss:$16 sps:$4 sm:$0xff]   ;;  %v4384_v53 = vld [vmem:[#allocation5 + $0x3e4] ss:$16 sps:$4 sm:$0xff]  }
  0xe8   :  { %v4324_v54 = vld [vmem:[#allocation5 + $0x164] ss:$16 sps:$4 sm:$0xff]  }
  0xea   :  { %1131 = vmatpush2.bf16.msra.mxu0 %v4256_v55  ;;  %1172 = vmatpush2.bf16.msra.mxu1 %v4259_v56  ;;  %v4322_v55 = vld [vmem:[#allocation5 + $0x160] ss:$16 sps:$4 sm:$0xff]  }
  0xeb   :  { %1132 = vmatprep.subr.bf16.mxu0 %v4264_v57  ;;  %1173 = vmatprep.subr.bf16.mxu1 %v4267_v58  ;;  %v4388_v56 = vld [vmem:[#allocation5 + $0x3c0] ss:$16 sps:$4 sm:$0xff]   ;;  %v4390_v57 = vld [vmem:[#allocation5 + $0x3c4] ss:$16 sps:$4 sm:$0xff]  }
  0xec   :  { %v4327_v58 = vld [vmem:[#allocation5 + $0x144] ss:$16 sps:$4 sm:$0xff]  }
  0xee   :  { %1133 = vmatpush2.bf16.msra.mxu0 %v4262_v59  ;;  %1174 = vmatpush2.bf16.msra.mxu1 %v4265_v60  ;;  %v4325_v59 = vld [vmem:[#allocation5 + $0x140] ss:$16 sps:$4 sm:$0xff]  }
  0xef   :  { %1134 = vmatprep.subr.bf16.mxu0 %v4270_v61  ;;  %1175 = vmatprep.subr.bf16.mxu1 %v4273_v62  ;;  %v4394_v60 = vld [vmem:[#allocation5 + $0x3a0] ss:$16 sps:$4 sm:$0xff]   ;;  %v4396_v61 = vld [vmem:[#allocation5 + $0x3a4] ss:$16 sps:$4 sm:$0xff]  }
  0xf0   :  { %v4330_v62 = vld [vmem:[#allocation5 + $0x124] ss:$16 sps:$4 sm:$0xff]  }
  0xf2   :  { %1135 = vmatpush2.bf16.msra.mxu0 %v4268_v63  ;;  %1176 = vmatpush2.bf16.msra.mxu1 %v4271_v1  ;;  %v4328_v63 = vld [vmem:[#allocation5 + $0x120] ss:$16 sps:$4 sm:$0xff]  }
  0xf3   :  { %1136 = vmatprep.subr.bf16.mxu0 %v4276_v2  ;;  %1177 = vmatprep.subr.bf16.mxu1 %v4279_v3  ;;  %v4400_v1 = vld [vmem:[#allocation5 + $0x380] ss:$16 sps:$4 sm:$0xff]   ;;  %v4402_v2 = vld [vmem:[#allocation5 + $0x384] ss:$16 sps:$4 sm:$0xff]  }
  0xf4   :  { %v4333_v3 = vld [vmem:[#allocation5 + $0x104] ss:$16 sps:$4 sm:$0xff]  }
  0xf6   :  { %1137 = vmatpush2.bf16.msra.mxu0 %v4274_v4  ;;  %1178 = vmatpush2.bf16.msra.mxu1 %v4277_v5  ;;  %v4331_v4 = vld [vmem:[#allocation5 + $0x100] ss:$16 sps:$4 sm:$0xff]  }
  0xf7   :  { %1138 = vmatprep.subr.bf16.mxu0 %v4282_v6  ;;  %1179 = vmatprep.subr.bf16.mxu1 %v4285_v7  ;;  %v4406_v5 = vld [vmem:[#allocation5 + $0x360] ss:$16 sps:$4 sm:$0xff]   ;;  %v4408_v6 = vld [vmem:[#allocation5 + $0x364] ss:$16 sps:$4 sm:$0xff]   ;;  %v4339_v7 = vld [vmem:[#allocation5 + $0xec] ss:$16 sps:$4 sm:$0xff]  }
  0xfa   :  { %1139 = vmatpush2.bf16.msra.mxu0 %v4280_v8  ;;  %1180 = vmatpush2.bf16.msra.mxu1 %v4283_v11  ;;  %v4412_v8 = vld [vmem:[#allocation5 + $0x340] ss:$16 sps:$4 sm:$0xff]   ;;  %v4414_v11 = vld [vmem:[#allocation5 + $0x344] ss:$16 sps:$4 sm:$0xff]  }
  0xfb   :  { %2024 = vmatprep.subr.bf16.mxu0 %v4288_v12  ;;  %2065 = vmatprep.subr.bf16.mxu1 %v4336_v21  ;;  %v4420_v12 = vld [vmem:[#allocation5 + $0x324] ss:$16 sps:$4 sm:$0xff]  }
  0xfd   :  { %1141 = vmatmul.mubr.bf16.vlgmr.msra.gmra.mxu0 %v4924_v9  ;;  %1182 = vmatmul.mubr.bf16.vlgmr.msra.gmra.mxu1 %v4926_v10  ;;  %v4298_v9 = vld [vmem:[#allocation5 + $0x60] ss:$16 sps:$4 sm:$0xff]   ;;  %v4342_v10 = vld [vmem:[#allocation5 + $0x2c4] ss:$16 sps:$4 sm:$0xff]  }
  0xfe   :  { %2025 = vmatpush1.bf16.msra.mxu0 %v4286_v13  ;;  %2066 = vmatpush1.bf16.msra.mxu1 %v4334_v20  ;;  %v4418_v13 = vld [vmem:[#allocation5 + $0x320] ss:$16 sps:$4 sm:$0xff]  }
  0xff   :  { %2026 = vmatprep.subr.bf16.mxu0 %v4291_v15  ;;  %2067 = vmatprep.subr.bf16.mxu1 %v4342_v10  ;;  %v4426_v15 = vld [vmem:[#allocation5 + $0x304] ss:$16 sps:$4 sm:$0xff]  }
 0x102   :  { %2027 = vmatpush1.bf16.msra.mxu0 %v4289_v16  ;;  %2068 = vmatpush1.bf16.msra.mxu1 %v4340_v24  ;;  %v4424_v16 = vld [vmem:[#allocation5 + $0x300] ss:$16 sps:$4 sm:$0xff]  }
 0x103   :  { %2028 = vmatprep.subr.bf16.mxu0 %v4294_v17  ;;  %2069 = vmatprep.subr.bf16.mxu1 %v4348_v29  ;;  %v4432_v17 = vld [vmem:[#allocation5 + $0x2ec] ss:$16 sps:$4 sm:$0xff]  }
 0x106   :  { %2029 = vmatpush1.bf16.msra.mxu0 %v4292_v18  ;;  %2070 = vmatpush1.bf16.msra.mxu1 %v4346_v28  ;;  %v3744_v18 = vld.sshfl [vmem:[%s5027_s4] sm:$0x33 pattern:$0x75316420] }
 0x107   :  { %2030 = vmatprep.subr.bf16.mxu0 %v4297_v19  ;;  %2071 = vmatprep.subr.bf16.mxu1 %v4354_v33  ;;  %v1203_v19 = vcombine.high %v3744_v18, %v3744_v18  ;;  %v4936_v20 = vrot.slane %v3744_v18, %v4904_v14 }
 0x109   :  { %v4939_v21 = vrot.slane %v1203_v19, %v4904_v14 }
 0x10a   :  { %2031 = vmatpush1.bf16.msra.mxu0 %v4295_v22  ;;  %2072 = vmatpush1.bf16.msra.mxu1 %v4352_v32  ;;  %v1221_v22 = vpack.i.b16 %v4936_v20, %v4936_v20 }
 0x10b   :  { %2032 = vmatprep.subr.bf16.mxu0 %v4300_v23  ;;  %2073 = vmatprep.subr.bf16.mxu1 %v4360_v37  ;;  %v1228_v23 = vpack.i.b16 %v4939_v21, %v4939_v21 }
 0x10e   :  { %2033 = vmatpush1.bf16.msra.mxu0 %v4298_v9  ;;  %2074 = vmatpush1.bf16.msra.mxu1 %v4358_v36 }
 0x10f   :  { %2034 = vmatprep.subr.bf16.mxu0 %v4303_v25  ;;  %2075 = vmatprep.subr.bf16.mxu1 %v4366_v41  ;;  %v1226_v25 = vrot.slane %v1221_v22, %v4910_v27 }
 0x112   :  { %2035 = vmatpush1.bf16.msra.mxu0 %v4301_v26  ;;  %2076 = vmatpush1.bf16.msra.mxu1 %v4364_v40  ;;  %v4337_v40 = vld [vmem:[#allocation5 + $0xe8] ss:$16 sps:$4 sm:$0xff]  }
 0x113   :  { %2036 = vmatprep.subr.bf16.mxu0 %v4306_v30  ;;  %2077 = vmatprep.subr.bf16.mxu1 %v4372_v45  ;;  %v4349_v45 = vld [vmem:[#allocation5 + $0xa8] ss:$16 sps:$4 sm:$0xff]  }
 0x116   :  { %2037 = vmatpush1.bf16.msra.mxu0 %v4304_v31  ;;  %2078 = vmatpush1.bf16.msra.mxu1 %v4370_v44  ;;  %v1233_v31 = vrot.slane %v1228_v23, %v4910_v27  ;;  %v4351_v44 = vld [vmem:[#allocation5 + $0xac] ss:$16 sps:$4 sm:$0xff]  }
 0x117   :  { %2038 = vmatprep.subr.bf16.mxu0 %v4309_v34  ;;  %2079 = vmatprep.subr.bf16.mxu1 %v4378_v49  ;;  %v4361_v49 = vld [vmem:[#allocation5 + $0x68] ss:$16 sps:$4 sm:$0xff]  }
 0x11a   :  { %2039 = vmatpush1.bf16.msra.mxu0 %v4307_v35  ;;  %2080 = vmatpush1.bf16.msra.mxu1 %v4376_v48  ;;  %v4363_v48 = vld [vmem:[#allocation5 + $0x6c] ss:$16 sps:$4 sm:$0xff]  }
 0x11b   :  { %2040 = vmatprep.subr.bf16.mxu0 %v4312_v38  ;;  %2081 = vmatprep.subr.bf16.mxu1 %v4384_v53  ;;  %v4373_v53 = vld [vmem:[#allocation5 + $0x28] ss:$16 sps:$4 sm:$0xff]  }
 0x11e   :  { %2041 = vmatpush2.bf16.msra.mxu0 %v4310_v39  ;;  %2082 = vmatpush2.bf16.msra.mxu1 %v4382_v52  ;;  %v4375_v52 = vld [vmem:[#allocation5 + $0x2c] ss:$16 sps:$4 sm:$0xff]  }
 0x11f   :  { %2042 = vmatprep.subr.bf16.mxu0 %v4315_v42  ;;  %2083 = vmatprep.subr.bf16.mxu1 %v4390_v57  ;;  %v4345_v42 = vld [vmem:[#allocation5 + $0xcc] ss:$16 sps:$4 sm:$0xff]   ;;  %v4385_v57 = vld [vmem:[#allocation5 + $0x1e8] ss:$16 sps:$4 sm:$0xff]  }
 0x122   :  { %2043 = vmatpush2.bf16.msra.mxu0 %v4313_v43  ;;  %2084 = vmatpush2.bf16.msra.mxu1 %v4388_v56  ;;  %v4343_v43 = vld [vmem:[#allocation5 + $0xc8] ss:$16 sps:$4 sm:$0xff]   ;;  %v4387_v56 = vld [vmem:[#allocation5 + $0x1ec] ss:$16 sps:$4 sm:$0xff]  }
 0x123   :  { %2044 = vmatprep.subr.bf16.mxu0 %v4318_v46  ;;  %2085 = vmatprep.subr.bf16.mxu1 %v4396_v61  ;;  %v4357_v46 = vld [vmem:[#allocation5 + $0x8c] ss:$16 sps:$4 sm:$0xff]   ;;  %v4397_v61 = vld [vmem:[#allocation5 + $0x1a8] ss:$16 sps:$4 sm:$0xff]  }
 0x126   :  { %2045 = vmatpush2.bf16.msra.mxu0 %v4316_v47  ;;  %2086 = vmatpush2.bf16.msra.mxu1 %v4394_v60  ;;  %v4355_v47 = vld [vmem:[#allocation5 + $0x88] ss:$16 sps:$4 sm:$0xff]   ;;  %v4399_v60 = vld [vmem:[#allocation5 + $0x1ac] ss:$16 sps:$4 sm:$0xff]  }
 0x127   :  { %2046 = vmatprep.subr.bf16.mxu0 %v4321_v50  ;;  %2087 = vmatprep.subr.bf16.mxu1 %v4402_v2  ;;  %v4369_v50 = vld [vmem:[#allocation5 + $0x4c] ss:$16 sps:$4 sm:$0xff]   ;;  %v4409_v2 = vld [vmem:[#allocation5 + $0x168] ss:$16 sps:$4 sm:$0xff]  }
 0x12a   :  { %2047 = vmatpush2.bf16.msra.mxu0 %v4319_v51  ;;  %2088 = vmatpush2.bf16.msra.mxu1 %v4400_v1  ;;  %v4367_v51 = vld [vmem:[#allocation5 + $0x48] ss:$16 sps:$4 sm:$0xff]   ;;  %v4411_v1 = vld [vmem:[#allocation5 + $0x16c] ss:$16 sps:$4 sm:$0xff]  }
 0x12b   :  { %2048 = vmatprep.subr.bf16.mxu0 %v4324_v54  ;;  %2089 = vmatprep.subr.bf16.mxu1 %v4408_v6  ;;  %v4381_v54 = vld [vmem:[#allocation5 + $0xc] ss:$16 sps:$4 sm:$0xff]   ;;  %v4415_v6 = vld [vmem:[#allocation5 + $0x148] ss:$16 sps:$4 sm:$0xff]  }
 0x12e   :  { %2049 = vmatpush2.bf16.msra.mxu0 %v4322_v55  ;;  %2090 = vmatpush2.bf16.msra.mxu1 %v4406_v5  ;;  %v4379_v55 = vld [vmem:[#allocation5 + $0x8] ss:$16 sps:$4 sm:$0xff]   ;;  %v1219_v5 = vcombine.high %v4939_v21, %v4939_v21 }
 0x12f   :  { %2050 = vmatprep.subr.bf16.mxu0 %v4327_v58  ;;  %2091 = vmatprep.subr.bf16.mxu1 %v4414_v11  ;;  %v4393_v58 = vld [vmem:[#allocation5 + $0x1cc] ss:$16 sps:$4 sm:$0xff]  }
 0x130   :  { %v1242_v11 = vpack.i.b16 %v1219_v5, %v1219_v5  ;;  %v4462_v5 = vld [vmem:[#allocation5 + $0x3ac] ss:$16 sps:$4 sm:$0xff]  }
 0x132   :  { %2051 = vmatpush2.bf16.msra.mxu0 %v4325_v59  ;;  %2092 = vmatpush2.bf16.msra.mxu1 %v4412_v8  ;;  %v4391_v59 = vld [vmem:[#allocation5 + $0x1c8] ss:$16 sps:$4 sm:$0xff]   ;;  %v4423_v8 = vld [vmem:[#allocation5 + $0x12c] ss:$16 sps:$4 sm:$0xff]   ;;  %v1247_v21 = vrot.slane %v1242_v11, %v4910_v27 }
 0x133   :  { %2052 = vmatprep.subr.bf16.mxu0 %v4330_v62  ;;  %2093 = vmatprep.subr.bf16.mxu1 %v4420_v12  ;;  %v4405_v62 = vld [vmem:[#allocation5 + $0x18c] ss:$16 sps:$4 sm:$0xff]  }
 0x134   :  { %v4465_v11 = vld [vmem:[#allocation5 + $0x38c] ss:$16 sps:$4 sm:$0xff]  }
 0x136   :  { %2053 = vmatpush2.bf16.msra.mxu0 %v4328_v63  ;;  %2094 = vmatpush2.bf16.msra.mxu1 %v4418_v13  ;;  %v4403_v63 = vld [vmem:[#allocation5 + $0x188] ss:$16 sps:$4 sm:$0xff]  }
 0x137   :  { %2054 = vmatprep.subr.bf16.mxu0 %v4333_v3  ;;  %2095 = vmatprep.subr.bf16.mxu1 %v4426_v15  ;;  %v1218_v3 = vcombine.high %v4936_v20, %v4936_v20  ;;  %v4429_v20 = vld [vmem:[#allocation5 + $0x10c] ss:$16 sps:$4 sm:$0xff]  }
 0x13a   :  { %2055 = vmatpush2.bf16.msra.mxu0 %v4331_v4  ;;  %2096 = vmatpush2.bf16.msra.mxu1 %v4424_v16  ;;  %v4417_v4 = vld [vmem:[#allocation5 + $0x14c] ss:$16 sps:$4 sm:$0xff]   ;;  %v4421_v16 = vld [vmem:[#allocation5 + $0x128] ss:$16 sps:$4 sm:$0xff]  }
 0x13b   :  { %2106 = vmatprep.subr.bf16.mxu0 %v4339_v7  ;;  %2147 = vmatprep.subr.bf16.mxu1 %v4432_v17  ;;  %v1235_v7 = vpack.i.b16 %v1218_v3, %v1218_v3  ;;  %v4457_v3 = vld [vmem:[#allocation5 + $0x3c8] ss:$16 sps:$4 sm:$0xff]  }
 0x13d   :  { %v1240_v17 = vrot.slane %v1235_v7, %v4910_v27  ;;  %v4460_v7 = vld [vmem:[#allocation5 + $0x3a8] ss:$16 sps:$4 sm:$0xff]  }
 0x17d   :  { %v1060_v9 = vpop.f32.mrf.mxu0  ;;  %v1101_v24 = vpop.f32.mrf.mxu1 }
 0x17e   :  { %v1102_v10 = vadd.f32 %v1101_v24, %v1060_v9 }
 0x17f   :  { %v1062_v26 = vpop.f32.mrf.mxu0  ;;  %v1103_v28 = vpop.f32.mrf.mxu1 }
 0x180   :  { %v1190_v29 = vpack.c.bf16 %v1102_v10, %v1102_v10  ;;  %v1104_v30 = vadd.f32 %v1103_v28, %v1062_v26 }
 0x181   :  { %v1064_v32 = vpop.f32.mrf.mxu0  ;;  %v1105_v33 = vpop.f32.mrf.mxu1 }
 0x182   :  { %v1191_v34 = vpack.c.bf16 %v1104_v30, %v1104_v30  ;;  %v1248_v35 = vadd.bf16 %v1226_v25, %v1190_v29  ;;  %v4427_v25 = vld [vmem:[#allocation5 + $0x108] ss:$16 sps:$4 sm:$0xff]  }
 0x183   :  { %v1065_v36 = vpop.f32.mrf.mxu0  ;;  %v1106_v37 = vpop.f32.mrf.mxu1  ;;  %v4430_v32 = vld [vmem:[#allocation5 + $0x2e8] ss:$16 sps:$4 sm:$0xff]  }
 0x184   :  { %v1249_v38 = vadd.bf16 %v1233_v31, %v1191_v34  ;;  %v4949_v41 = vmax.bf16 %v4818_v0, %v1248_v35  ;;  %v4435_v34 = vld [vmem:[#allocation5 + $0x2cc] ss:$16 sps:$4 sm:$0xff]   ;;  %v4433_v35 = vld [vmem:[#allocation5 + $0x2c8] ss:$16 sps:$4 sm:$0xff]  }
 0x185   :  { %v4438_v36 = vld [vmem:[#allocation5 + $0x2ac] ss:$16 sps:$4 sm:$0xff]   ;;  %v4436_v37 = vld [vmem:[#allocation5 + $0x2a8] ss:$16 sps:$4 sm:$0xff]  }
 0x186   :  { %v1253_v39 = vmax.bf16 %v4818_v0, %v1249_v38  ;;  %v4441_v38 = vld [vmem:[#allocation5 + $0x28c] ss:$16 sps:$4 sm:$0xff]  }
 0x188   :  { %2056 = vmatprep.mubr.bf16.mxu0 %v1253_v39 }
 0x189   :  { %2057 = vmatmul.mubr.bf16.vlgmr.msra.gmra.mxu0 %v4949_v41 }
 0x18a   :  { %2107 = vmatpush1.bf16.msra.mxu0 %v4337_v40  ;;  %2138 = vmatprep.mubr.bf16.mxu0 %v1253_v39  ;;  %v4478_v39 = vld [vmem:[#allocation7 + $0xe0] ss:$16 sps:$4 sm:$0xff]   ;;  %v4480_v40 = vld [vmem:[#allocation7 + $0xe4] ss:$16 sps:$4 sm:$0xff]  }
 0x18b   :  { %2108 = vmatprep.subr.bf16.mxu0 %v4345_v42  ;;  %v4483_v42 = vld [vmem:[#allocation7 + $0xc4] ss:$16 sps:$4 sm:$0xff]  }
 0x18e   :  { %2109 = vmatpush1.bf16.msra.mxu0 %v4343_v43  ;;  %v4439_v43 = vld [vmem:[#allocation5 + $0x288] ss:$16 sps:$4 sm:$0xff]  }
 0x18f   :  { %2110 = vmatprep.subr.bf16.mxu0 %v4351_v44  ;;  %v4481_v44 = vld [vmem:[#allocation7 + $0xc0] ss:$16 sps:$4 sm:$0xff]  }
 0x192   :  { %2111 = vmatpush1.bf16.msra.mxu0 %v4349_v45  ;;  %v4444_v45 = vld [vmem:[#allocation5 + $0x26c] ss:$16 sps:$4 sm:$0xff]  }
 0x193   :  { %2112 = vmatprep.subr.bf16.mxu0 %v4357_v46  ;;  %v4442_v46 = vld [vmem:[#allocation5 + $0x268] ss:$16 sps:$4 sm:$0xff]  }
 0x196   :  { %2113 = vmatpush1.bf16.msra.mxu0 %v4355_v47  ;;  %v4484_v47 = vld [vmem:[#allocation7 + $0xa0] ss:$16 sps:$4 sm:$0xff]  }
 0x197   :  { %2114 = vmatprep.subr.bf16.mxu0 %v4363_v48  ;;  %v4447_v48 = vld [vmem:[#allocation5 + $0x24c] ss:$16 sps:$4 sm:$0xff]  }
 0x19a   :  { %2115 = vmatpush1.bf16.msra.mxu0 %v4361_v49  ;;  %v4489_v49 = vld [vmem:[#allocation7 + $0x84] ss:$16 sps:$4 sm:$0xff]  }
 0x19b   :  { %2116 = vmatprep.subr.bf16.mxu0 %v4369_v50  ;;  %v4445_v50 = vld [vmem:[#allocation5 + $0x248] ss:$16 sps:$4 sm:$0xff]  }
 0x19e   :  { %2117 = vmatpush1.bf16.msra.mxu0 %v4367_v51  ;;  %v4487_v51 = vld [vmem:[#allocation7 + $0x80] ss:$16 sps:$4 sm:$0xff]  }
 0x19f   :  { %2118 = vmatprep.subr.bf16.mxu0 %v4375_v52  ;;  %v4450_v52 = vld [vmem:[#allocation5 + $0x22c] ss:$16 sps:$4 sm:$0xff]  }
 0x1a2   :  { %2119 = vmatpush1.bf16.msra.mxu0 %v4373_v53  ;;  %v4492_v53 = vld [vmem:[#allocation7 + $0x64] ss:$16 sps:$4 sm:$0xff]  }
 0x1a3   :  { %2120 = vmatprep.subr.bf16.mxu0 %v4381_v54  ;;  %v4448_v54 = vld [vmem:[#allocation5 + $0x228] ss:$16 sps:$4 sm:$0xff]  }
 0x1a6   :  { %2121 = vmatpush1.bf16.msra.mxu0 %v4379_v55  ;;  %v4490_v55 = vld [vmem:[#allocation7 + $0x60] ss:$16 sps:$4 sm:$0xff]  }
 0x1a7   :  { %2122 = vmatprep.subr.bf16.mxu0 %v4387_v56  ;;  %v4453_v56 = vld [vmem:[#allocation5 + $0x20c] ss:$16 sps:$4 sm:$0xff]  }
 0x1aa   :  { %2123 = vmatpush2.bf16.msra.mxu0 %v4385_v57  ;;  %v4495_v57 = vld [vmem:[#allocation7 + $0x44] ss:$16 sps:$4 sm:$0xff]  }
 0x1ab   :  { %2124 = vmatprep.subr.bf16.mxu0 %v4393_v58  ;;  %v4451_v58 = vld [vmem:[#allocation5 + $0x208] ss:$16 sps:$4 sm:$0xff]  }
 0x1ae   :  { %2125 = vmatpush2.bf16.msra.mxu0 %v4391_v59  ;;  %v4493_v59 = vld [vmem:[#allocation7 + $0x40] ss:$16 sps:$4 sm:$0xff]  }
 0x1af   :  { %2126 = vmatprep.subr.bf16.mxu0 %v4399_v60  ;;  %v4456_v60 = vld [vmem:[#allocation5 + $0x3ec] ss:$16 sps:$4 sm:$0xff]  }
 0x1b2   :  { %2127 = vmatpush2.bf16.msra.mxu0 %v4397_v61  ;;  %v4498_v61 = vld [vmem:[#allocation7 + $0x24] ss:$16 sps:$4 sm:$0xff]  }
 0x1b3   :  { %2128 = vmatprep.subr.bf16.mxu0 %v4405_v62  ;;  %v4454_v62 = vld [vmem:[#allocation5 + $0x3e8] ss:$16 sps:$4 sm:$0xff]  }
 0x1b6   :  { %2129 = vmatpush2.bf16.msra.mxu0 %v4403_v63  ;;  %v4496_v63 = vld [vmem:[#allocation7 + $0x20] ss:$16 sps:$4 sm:$0xff]  }
 0x1b7   :  { %2130 = vmatprep.subr.bf16.mxu0 %v4411_v1  ;;  %v4459_v1 = vld [vmem:[#allocation5 + $0x3cc] ss:$16 sps:$4 sm:$0xff]  }
 0x1ba   :  { %2131 = vmatpush2.bf16.msra.mxu0 %v4409_v2  ;;  %v4501_v2 = vld [vmem:[#allocation7 + $0x4] ss:$16 sps:$4 sm:$0xff]  }
 0x1bb   :  { %2132 = vmatprep.subr.bf16.mxu0 %v4417_v4  ;;  %v4499_v4 = vld [vmem:[#allocation7] ss:$16 sps:$4 sm:$0xff]  }
 0x1bd   :  { %v1142_v12 = vpop.f32.mrf.mxu0  ;;  %v1183_v13 = vpop.f32.mrf.mxu1 }
 0x1be   :  { %v1184_v15 = vadd.f32 %v1183_v13, %v1142_v12  ;;  %2133 = vmatpush2.bf16.msra.mxu0 %v4415_v6  ;;  %v4504_v6 = vld [vmem:[#allocation7 + $0x1e4] ss:$16 sps:$4 sm:$0xff]   ;;  %v4463_v13 = vld [vmem:[#allocation5 + $0x388] ss:$16 sps:$4 sm:$0xff]  }
 0x1bf   :  { %v1144_v18 = vpop.f32.mrf.mxu0  ;;  %v1185_v19 = vpop.f32.mrf.mxu1  ;;  %2134 = vmatprep.subr.bf16.mxu0 %v4423_v8  ;;  %v4502_v8 = vld [vmem:[#allocation7 + $0x1e0] ss:$16 sps:$4 sm:$0xff]   ;;  %v4507_v12 = vld [vmem:[#allocation7 + $0x1c4] ss:$16 sps:$4 sm:$0xff]  }
 0x1c0   :  { %v1192_v22 = vpack.c.bf16 %v1184_v15, %v1184_v15  ;;  %v1186_v23 = vadd.f32 %v1185_v19, %v1144_v18  ;;  %v4505_v15 = vld [vmem:[#allocation7 + $0x1c0] ss:$16 sps:$4 sm:$0xff]   ;;  %v4466_v18 = vld [vmem:[#allocation5 + $0x368] ss:$16 sps:$4 sm:$0xff]  }
 0x1c1   :  { %v1146_v9 = vpop.f32.mrf.mxu0  ;;  %v1187_v24 = vpop.f32.mrf.mxu1  ;;  %v4508_v19 = vld [vmem:[#allocation7 + $0x1a0] ss:$16 sps:$4 sm:$0xff]  }
 0x1c2   :  { %v1193_v10 = vpack.c.bf16 %v1186_v23, %v1186_v23  ;;  %2135 = vmatpush2.bf16.msra.mxu0 %v4421_v16  ;;  %v1250_v26 = vadd.bf16 %v1240_v17, %v1192_v22  ;;  %v4468_v16 = vld [vmem:[#allocation5 + $0x36c] ss:$16 sps:$4 sm:$0xff]   ;;  %v4510_v17 = vld [vmem:[#allocation7 + $0x1a4] ss:$16 sps:$4 sm:$0xff]   ;;  %v4469_v23 = vld [vmem:[#allocation5 + $0x348] ss:$16 sps:$4 sm:$0xff]  }
 0x1c3   :  { %v1147_v28 = vpop.f32.mrf.mxu0  ;;  %v1188_v29 = vpop.f32.mrf.mxu1  ;;  %2136 = vmatprep.subr.bf16.mxu0 %v4429_v20  ;;  %v4471_v20 = vld [vmem:[#allocation5 + $0x34c] ss:$16 sps:$4 sm:$0xff]   ;;  %v4513_v22 = vld [vmem:[#allocation7 + $0x184] ss:$16 sps:$4 sm:$0xff]  }
 0x1c4   :  { %v1251_v30 = vadd.bf16 %v1247_v21, %v1193_v10  ;;  %v4960_v33 = vmax.bf16 %v4818_v0, %v1250_v26  ;;  %v4511_v21 = vld [vmem:[#allocation7 + $0x180] ss:$16 sps:$4 sm:$0xff]   ;;  %v4474_v9 = vld [vmem:[#allocation5 + $0x32c] ss:$16 sps:$4 sm:$0xff]   ;;  %v4516_v24 = vld [vmem:[#allocation7 + $0x164] ss:$16 sps:$4 sm:$0xff]  }
 0x1c5   :  { %v4472_v10 = vld [vmem:[#allocation5 + $0x328] ss:$16 sps:$4 sm:$0xff]   ;;  %v4477_v26 = vld [vmem:[#allocation5 + $0x30c] ss:$16 sps:$4 sm:$0xff]   ;;  %v4519_v28 = vld [vmem:[#allocation7 + $0x144] ss:$16 sps:$4 sm:$0xff]  }
 0x1c6   :  { %2137 = vmatpush2.bf16.msra.mxu0 %v4427_v25  ;;  %v1255_v31 = vmax.bf16 %v4818_v0, %v1251_v30  ;;  %v4514_v25 = vld [vmem:[#allocation7 + $0x160] ss:$16 sps:$4 sm:$0xff]   ;;  %v4475_v29 = vld [vmem:[#allocation5 + $0x308] ss:$16 sps:$4 sm:$0xff]  }
 0x1c7   :  { %3022 = vmatprep.subr.bf16.mxu0 %v4480_v40  ;;  %v4517_v30 = vld [vmem:[#allocation7 + $0x140] ss:$16 sps:$4 sm:$0xff]   ;;  %v4534_v40 = vld [vmem:[#allocation7 + $0x2c4] ss:$16 sps:$4 sm:$0xff]  }
 0x1c8   :  { %2097 = vmatprep.mubr.bf16.mxu1 %v1255_v31 }
 0x1c9   :  { %2098 = vmatmul.mubr.bf16.vlgmr.msra.gmra.mxu1 %v4960_v33  ;;  %2139 = vmatmul.mubr.bf16.vlgmr.msra.gmra.mxu0 %v4949_v41  ;;  %v4486_v41 = vld [vmem:[#allocation7 + $0xa4] ss:$16 sps:$4 sm:$0xff]  }
 0x1ca   :  { %2148 = vmatpush1.bf16.msra.mxu1 %v4430_v32  ;;  %2179 = vmatprep.mubr.bf16.mxu1 %v1255_v31  ;;  %v4522_v31 = vld [vmem:[#allocation7 + $0x124] ss:$16 sps:$4 sm:$0xff]   ;;  %v4520_v32 = vld [vmem:[#allocation7 + $0x120] ss:$16 sps:$4 sm:$0xff]  }
 0x1cb   :  { %2149 = vmatprep.subr.bf16.mxu1 %v4435_v34  ;;  %3023 = vmatpush1.bf16.msra.mxu0 %v4478_v39  ;;  %v4525_v34 = vld [vmem:[#allocation7 + $0x104] ss:$16 sps:$4 sm:$0xff]   ;;  %v4532_v39 = vld [vmem:[#allocation7 + $0x2c0] ss:$16 sps:$4 sm:$0xff]  }
 0x1cc   :  { %3024 = vmatprep.subr.bf16.mxu0 %v4483_v42  ;;  %v4538_v42 = vld [vmem:[#allocation7 + $0x2a0] ss:$16 sps:$4 sm:$0xff]  }
 0x1ce   :  { %2150 = vmatpush1.bf16.msra.mxu1 %v4433_v35  ;;  %v4523_v35 = vld [vmem:[#allocation7 + $0x100] ss:$16 sps:$4 sm:$0xff]  }
 0x1cf   :  { %2151 = vmatprep.subr.bf16.mxu1 %v4438_v36  ;;  %3025 = vmatpush1.bf16.msra.mxu0 %v4481_v44  ;;  %v4526_v36 = vld [vmem:[#allocation7 + $0x2e0] ss:$16 sps:$4 sm:$0xff]   ;;  %v4546_v44 = vld [vmem:[#allocation7 + $0x284] ss:$16 sps:$4 sm:$0xff]  }
 0x1d0   :  { %3026 = vmatprep.subr.bf16.mxu0 %v4486_v41  ;;  %v4552_v41 = vld [vmem:[#allocation7 + $0x264] ss:$16 sps:$4 sm:$0xff]  }
 0x1d2   :  { %2152 = vmatpush1.bf16.msra.mxu1 %v4436_v37  ;;  %v4528_v37 = vld [vmem:[#allocation7 + $0x2e4] ss:$16 sps:$4 sm:$0xff]  }
 0x1d3   :  { %2153 = vmatprep.subr.bf16.mxu1 %v4441_v38  ;;  %3027 = vmatpush1.bf16.msra.mxu0 %v4484_v47  ;;  %v4531_v38 = vld [vmem:[#allocation7 + $0xec] ss:$16 sps:$4 sm:$0xff]   ;;  %v4558_v47 = vld [vmem:[#allocation7 + $0x244] ss:$16 sps:$4 sm:$0xff]  }
 0x1d4   :  { %3028 = vmatprep.subr.bf16.mxu0 %v4489_v49  ;;  %v4564_v49 = vld [vmem:[#allocation7 + $0x224] ss:$16 sps:$4 sm:$0xff]  }
 0x1d6   :  { %2154 = vmatpush1.bf16.msra.mxu1 %v4439_v43  ;;  %v4544_v43 = vld [vmem:[#allocation7 + $0x280] ss:$16 sps:$4 sm:$0xff]  }
 0x1d7   :  { %2155 = vmatprep.subr.bf16.mxu1 %v4444_v45  ;;  %3029 = vmatpush1.bf16.msra.mxu0 %v4487_v51  ;;  %v4550_v45 = vld [vmem:[#allocation7 + $0x260] ss:$16 sps:$4 sm:$0xff]   ;;  %v4570_v51 = vld [vmem:[#allocation7 + $0x204] ss:$16 sps:$4 sm:$0xff]  }
 0x1d8   :  { %3030 = vmatprep.subr.bf16.mxu0 %v4492_v53  ;;  %v4576_v53 = vld [vmem:[#allocation7 + $0x3e4] ss:$16 sps:$4 sm:$0xff]  }
 0x1da   :  { %2156 = vmatpush1.bf16.msra.mxu1 %v4442_v46  ;;  %v4556_v46 = vld [vmem:[#allocation7 + $0x240] ss:$16 sps:$4 sm:$0xff]  }
 0x1db   :  { %2157 = vmatprep.subr.bf16.mxu1 %v4447_v48  ;;  %3031 = vmatpush1.bf16.msra.mxu0 %v4490_v55  ;;  %v4562_v48 = vld [vmem:[#allocation7 + $0x220] ss:$16 sps:$4 sm:$0xff]   ;;  %v4582_v55 = vld [vmem:[#allocation7 + $0x3c4] ss:$16 sps:$4 sm:$0xff]  }
 0x1dc   :  { %3032 = vmatprep.subr.bf16.mxu0 %v4495_v57  ;;  %v4588_v57 = vld [vmem:[#allocation7 + $0x3a4] ss:$16 sps:$4 sm:$0xff]  }
 0x1de   :  { %2158 = vmatpush1.bf16.msra.mxu1 %v4445_v50  ;;  %v4568_v50 = vld [vmem:[#allocation7 + $0x200] ss:$16 sps:$4 sm:$0xff]  }
 0x1df   :  { %2159 = vmatprep.subr.bf16.mxu1 %v4450_v52  ;;  %3033 = vmatpush1.bf16.msra.mxu0 %v4493_v59  ;;  %v4574_v52 = vld [vmem:[#allocation7 + $0x3e0] ss:$16 sps:$4 sm:$0xff]   ;;  %v4594_v59 = vld [vmem:[#allocation7 + $0x384] ss:$16 sps:$4 sm:$0xff]  }
 0x1e0   :  { %3034 = vmatprep.subr.bf16.mxu0 %v4498_v61  ;;  %v4600_v61 = vld [vmem:[#allocation7 + $0x364] ss:$16 sps:$4 sm:$0xff]  }
 0x1e2   :  { %2160 = vmatpush1.bf16.msra.mxu1 %v4448_v54  ;;  %v4580_v54 = vld [vmem:[#allocation7 + $0x3c0] ss:$16 sps:$4 sm:$0xff]  }
 0x1e3   :  { %2161 = vmatprep.subr.bf16.mxu1 %v4453_v56  ;;  %3035 = vmatpush1.bf16.msra.mxu0 %v4496_v63  ;;  %v4586_v56 = vld [vmem:[#allocation7 + $0x3a0] ss:$16 sps:$4 sm:$0xff]   ;;  %v4606_v63 = vld [vmem:[#allocation7 + $0x344] ss:$16 sps:$4 sm:$0xff]  }
 0x1e4   :  { %3036 = vmatprep.subr.bf16.mxu0 %v4501_v2  ;;  %v4612_v2 = vld [vmem:[#allocation7 + $0x324] ss:$16 sps:$4 sm:$0xff]  }
 0x1e6   :  { %2162 = vmatpush1.bf16.msra.mxu1 %v4451_v58  ;;  %v4592_v58 = vld [vmem:[#allocation7 + $0x380] ss:$16 sps:$4 sm:$0xff]  }
 0x1e7   :  { %2163 = vmatprep.subr.bf16.mxu1 %v4456_v60  ;;  %3037 = vmatpush1.bf16.msra.mxu0 %v4499_v4  ;;  %v4598_v60 = vld [vmem:[#allocation7 + $0x360] ss:$16 sps:$4 sm:$0xff]  }
 0x1e8   :  { %3038 = vmatprep.subr.bf16.mxu0 %v4504_v6  ;;  %v4610_v4 = vld [vmem:[#allocation7 + $0x320] ss:$16 sps:$4 sm:$0xff]   ;;  %v4618_v6 = vld [vmem:[#allocation7 + $0x304] ss:$16 sps:$4 sm:$0xff]  }
 0x1ea   :  { %2164 = vmatpush2.bf16.msra.mxu1 %v4454_v62  ;;  %v4604_v62 = vld [vmem:[#allocation7 + $0x340] ss:$16 sps:$4 sm:$0xff]  }
 0x1eb   :  { %2165 = vmatprep.subr.bf16.mxu1 %v4459_v1  ;;  %3039 = vmatpush2.bf16.msra.mxu0 %v4502_v8  ;;  %v4616_v8 = vld [vmem:[#allocation7 + $0x300] ss:$16 sps:$4 sm:$0xff]  }
 0x1ec   :  { %3040 = vmatprep.subr.bf16.mxu0 %v4507_v12  ;;  %v3873_v12 = vld.sshfl [vmem:[%s5029_s6] sm:$0x33 pattern:$0x75316420] }
 0x1ee   :  { %2166 = vmatpush2.bf16.msra.mxu1 %v4457_v3 }
 0x1ef   :  { %2167 = vmatprep.subr.bf16.mxu1 %v4462_v5  ;;  %3041 = vmatpush2.bf16.msra.mxu0 %v4505_v15  ;;  %v4969_v15 = vrot.slane %v3873_v12, %v4904_v14 }
 0x1f0   :  { %3042 = vmatprep.subr.bf16.mxu0 %v4510_v17 }
 0x1f1   :  { %v2219_v17 = vpack.i.b16 %v4969_v15, %v4969_v15 }
 0x1f2   :  { %2168 = vmatpush2.bf16.msra.mxu1 %v4460_v7 }
 0x1f3   :  { %2169 = vmatprep.subr.bf16.mxu1 %v4465_v11  ;;  %3043 = vmatpush2.bf16.msra.mxu0 %v4508_v19  ;;  %v4624_v11 = vld [vmem:[#allocation7 + $0x2ec] ss:$16 sps:$4 sm:$0xff]  }
 0x1f4   :  { %3044 = vmatprep.subr.bf16.mxu0 %v4513_v22 }
 0x1f6   :  { %2170 = vmatpush2.bf16.msra.mxu1 %v4463_v13  ;;  %v2201_v13 = vcombine.high %v3873_v12, %v3873_v12  ;;  %v4621_v12 = vld [vmem:[#allocation7 + $0x10c] ss:$16 sps:$4 sm:$0xff]  }
 0x1f7   :  { %2171 = vmatprep.subr.bf16.mxu1 %v4468_v16  ;;  %3045 = vmatpush2.bf16.msra.mxu0 %v4511_v21 }
 0x1f8   :  { %3046 = vmatprep.subr.bf16.mxu0 %v4516_v24  ;;  %v4972_v16 = vrot.slane %v2201_v13, %v4904_v14 }
 0x1fa   :  { %2172 = vmatpush2.bf16.msra.mxu1 %v4466_v18  ;;  %v2226_v18 = vpack.i.b16 %v4972_v16, %v4972_v16 }
 0x1fb   :  { %2173 = vmatprep.subr.bf16.mxu1 %v4471_v20  ;;  %3047 = vmatpush2.bf16.msra.mxu0 %v4514_v25 }
 0x1fc   :  { %3048 = vmatprep.subr.bf16.mxu0 %v4519_v28  ;;  %v2231_v25 = vrot.slane %v2226_v18, %v4910_v27 }
 0x1fe   :  { %2174 = vmatpush2.bf16.msra.mxu1 %v4469_v23  ;;  %v2224_v23 = vrot.slane %v2219_v17, %v4910_v27 }
 0x1ff   :  { %2175 = vmatprep.subr.bf16.mxu1 %v4474_v9  ;;  %3049 = vmatpush2.bf16.msra.mxu0 %v4517_v30 }
 0x200   :  { %3050 = vmatprep.subr.bf16.mxu0 %v4522_v31 }
 0x202   :  { %2176 = vmatpush2.bf16.msra.mxu1 %v4472_v10 }
 0x203   :  { %2177 = vmatprep.subr.bf16.mxu1 %v4477_v26  ;;  %3051 = vmatpush2.bf16.msra.mxu0 %v4520_v32 }
 0x204   :  { %3052 = vmatprep.subr.bf16.mxu0 %v4525_v34 }
 0x206   :  { %2178 = vmatpush2.bf16.msra.mxu1 %v4475_v29 }
 0x207   :  { %3053 = vmatpush2.bf16.msra.mxu0 %v4523_v35  ;;  %3063 = vmatprep.subr.bf16.mxu1 %v4528_v37 }
 0x208   :  { %3104 = vmatprep.subr.bf16.mxu0 %v4531_v38  ;;  %v4537_v38 = vld [vmem:[#allocation7 + $0xcc] ss:$16 sps:$4 sm:$0xff]  }
 0x209   :  { %2180 = vmatmul.mubr.bf16.vlgmr.msra.gmra.mxu1 %v4960_v33  ;;  %v4540_v33 = vld [vmem:[#allocation7 + $0x2a4] ss:$16 sps:$4 sm:$0xff]  }
 0x20a   :  { %3064 = vmatpush1.bf16.msra.mxu1 %v4526_v36  ;;  %v4529_v36 = vld [vmem:[#allocation7 + $0xe8] ss:$16 sps:$4 sm:$0xff]  }
 0x20b   :  { %3065 = vmatprep.subr.bf16.mxu1 %v4534_v40  ;;  %v4543_v40 = vld [vmem:[#allocation7 + $0xac] ss:$16 sps:$4 sm:$0xff]  }
 0x20e   :  { %3066 = vmatpush1.bf16.msra.mxu1 %v4532_v39  ;;  %v4535_v39 = vld [vmem:[#allocation7 + $0xc8] ss:$16 sps:$4 sm:$0xff]  }
 0x20f   :  { %3067 = vmatprep.subr.bf16.mxu1 %v4540_v33  ;;  %v4549_v33 = vld [vmem:[#allocation7 + $0x8c] ss:$16 sps:$4 sm:$0xff]  }
 0x212   :  { %3068 = vmatpush1.bf16.msra.mxu1 %v4538_v42  ;;  %v4541_v42 = vld [vmem:[#allocation7 + $0xa8] ss:$16 sps:$4 sm:$0xff]  }
 0x213   :  { %3069 = vmatprep.subr.bf16.mxu1 %v4546_v44  ;;  %v4555_v44 = vld [vmem:[#allocation7 + $0x6c] ss:$16 sps:$4 sm:$0xff]  }
 0x216   :  { %3070 = vmatpush1.bf16.msra.mxu1 %v4544_v43  ;;  %v4547_v43 = vld [vmem:[#allocation7 + $0x88] ss:$16 sps:$4 sm:$0xff]  }
 0x217   :  { %3071 = vmatprep.subr.bf16.mxu1 %v4552_v41  ;;  %v4561_v41 = vld [vmem:[#allocation7 + $0x4c] ss:$16 sps:$4 sm:$0xff]  }
 0x21a   :  { %3072 = vmatpush1.bf16.msra.mxu1 %v4550_v45  ;;  %v4553_v45 = vld [vmem:[#allocation7 + $0x68] ss:$16 sps:$4 sm:$0xff]  }
 0x21b   :  { %3073 = vmatprep.subr.bf16.mxu1 %v4558_v47  ;;  %v4567_v47 = vld [vmem:[#allocation7 + $0x2c] ss:$16 sps:$4 sm:$0xff]  }
 0x21e   :  { %3074 = vmatpush1.bf16.msra.mxu1 %v4556_v46  ;;  %v4559_v46 = vld [vmem:[#allocation7 + $0x48] ss:$16 sps:$4 sm:$0xff]  }
 0x21f   :  { %3075 = vmatprep.subr.bf16.mxu1 %v4564_v49  ;;  %v4573_v49 = vld [vmem:[#allocation7 + $0xc] ss:$16 sps:$4 sm:$0xff]  }
 0x222   :  { %3076 = vmatpush1.bf16.msra.mxu1 %v4562_v48  ;;  %v4565_v48 = vld [vmem:[#allocation7 + $0x28] ss:$16 sps:$4 sm:$0xff]  }
 0x223   :  { %3077 = vmatprep.subr.bf16.mxu1 %v4570_v51  ;;  %v4579_v51 = vld [vmem:[#allocation7 + $0x1ec] ss:$16 sps:$4 sm:$0xff]  }
 0x226   :  { %3078 = vmatpush1.bf16.msra.mxu1 %v4568_v50  ;;  %v4571_v50 = vld [vmem:[#allocation7 + $0x8] ss:$16 sps:$4 sm:$0xff]  }
 0x227   :  { %3079 = vmatprep.subr.bf16.mxu1 %v4576_v53  ;;  %v4585_v53 = vld [vmem:[#allocation7 + $0x1cc] ss:$16 sps:$4 sm:$0xff]  }
 0x22a   :  { %3080 = vmatpush2.bf16.msra.mxu1 %v4574_v52  ;;  %v4577_v52 = vld [vmem:[#allocation7 + $0x1e8] ss:$16 sps:$4 sm:$0xff]  }
 0x22b   :  { %3081 = vmatprep.subr.bf16.mxu1 %v4582_v55  ;;  %v4591_v55 = vld [vmem:[#allocation7 + $0x1ac] ss:$16 sps:$4 sm:$0xff]  }
 0x22e   :  { %3082 = vmatpush2.bf16.msra.mxu1 %v4580_v54  ;;  %v4583_v54 = vld [vmem:[#allocation7 + $0x1c8] ss:$16 sps:$4 sm:$0xff]  }
 0x22f   :  { %3083 = vmatprep.subr.bf16.mxu1 %v4588_v57  ;;  %v4597_v57 = vld [vmem:[#allocation7 + $0x18c] ss:$16 sps:$4 sm:$0xff]  }
 0x232   :  { %3084 = vmatpush2.bf16.msra.mxu1 %v4586_v56  ;;  %v4589_v56 = vld [vmem:[#allocation7 + $0x1a8] ss:$16 sps:$4 sm:$0xff]  }
 0x233   :  { %3085 = vmatprep.subr.bf16.mxu1 %v4594_v59  ;;  %v4603_v59 = vld [vmem:[#allocation7 + $0x16c] ss:$16 sps:$4 sm:$0xff]  }
 0x236   :  { %3086 = vmatpush2.bf16.msra.mxu1 %v4592_v58  ;;  %v4595_v58 = vld [vmem:[#allocation7 + $0x188] ss:$16 sps:$4 sm:$0xff]  }
 0x237   :  { %3087 = vmatprep.subr.bf16.mxu1 %v4600_v61  ;;  %v2216_v61 = vcombine.high %v4969_v15, %v4969_v15 }
 0x23a   :  { %3088 = vmatpush2.bf16.msra.mxu1 %v4598_v60  ;;  %v4601_v60 = vld [vmem:[#allocation7 + $0x168] ss:$16 sps:$4 sm:$0xff]  }
 0x23b   :  { %3089 = vmatprep.subr.bf16.mxu1 %v4606_v63  ;;  %v2217_v63 = vcombine.high %v4972_v16, %v4972_v16 }
 0x23e   :  { %3090 = vmatpush2.bf16.msra.mxu1 %v4604_v62  ;;  %v4609_v62 = vld [vmem:[#allocation7 + $0x14c] ss:$16 sps:$4 sm:$0xff]  }
 0x23f   :  { %3091 = vmatprep.subr.bf16.mxu1 %v4612_v2  ;;  %v2233_v2 = vpack.i.b16 %v2216_v61, %v2216_v61  ;;  %v4666_v61 = vld [vmem:[#allocation7 + $0x32c] ss:$16 sps:$4 sm:$0xff]  }
 0x242   :  { %3092 = vmatpush2.bf16.msra.mxu1 %v4610_v4  ;;  %v2240_v4 = vpack.i.b16 %v2217_v63, %v2217_v63  ;;  %v4669_v63 = vld [vmem:[#allocation7 + $0x30c] ss:$16 sps:$4 sm:$0xff]  }
 0x243   :  { %3093 = vmatprep.subr.bf16.mxu1 %v4618_v6 }
 0x244   :  { %v2245_v16 = vrot.slane %v2240_v4, %v4910_v27  ;;  %v4682_v4 = vld [vmem:[#allocation8 + $0x48] sm:$0xff]  }
 0x246   :  { %3094 = vmatpush2.bf16.msra.mxu1 %v4616_v8  ;;  %v2238_v8 = vrot.slane %v2233_v2, %v4910_v27  ;;  %v4680_v2 = vld [vmem:[#allocation8 + $0x50] sm:$0xff]  }
 0x247   :  { %3145 = vmatprep.subr.bf16.mxu1 %v4624_v11 }
 0x249   :  { %v2058_v1 = vpop.f32.mrf.mxu0 }
 0x24b   :  { %v2060_v3 = vpop.f32.mrf.mxu0 }
 0x24d   :  { %v2062_v5 = vpop.f32.mrf.mxu0 }
 0x24f   :  { %v2063_v7 = vpop.f32.mrf.mxu0 }
 0x250   :  { %v4613_v7 = vld [vmem:[#allocation7 + $0x128] ss:$16 sps:$4 sm:$0xff]  }
 0x289   :  { %v2099_v19 = vpop.f32.mrf.mxu1  ;;  %v4978_v20 = vpop.f32.mrf.mxu0 }
 0x28a   :  { %v2100_v22 = vadd.f32 %v2099_v19, %v2058_v1  ;;  %v4607_v1 = vld [vmem:[#allocation7 + $0x148] ss:$16 sps:$4 sm:$0xff]  }
 0x28b   :  { %v2101_v21 = vpop.f32.mrf.mxu1  ;;  %v4981_v9 = vpop.f32.mrf.mxu0  ;;  %v4619_v19 = vld [vmem:[#allocation7 + $0x108] ss:$16 sps:$4 sm:$0xff]  }
 0x28c   :  { %v2188_v24 = vpack.c.bf16 %v2100_v22, %v2100_v22  ;;  %v2102_v10 = vadd.f32 %v2101_v21, %v2060_v3  ;;  %v4615_v3 = vld [vmem:[#allocation7 + $0x12c] ss:$16 sps:$4 sm:$0xff]  }
 0x28d   :  { %v2103_v26 = vpop.f32.mrf.mxu1  ;;  %v2144_v28 = vpop.f32.mrf.mxu0 }
 0x28e   :  { %v2189_v29 = vpack.c.bf16 %v2102_v10, %v2102_v10  ;;  %v2246_v30 = vadd.bf16 %v2224_v23, %v2188_v24  ;;  %v4622_v24 = vld [vmem:[#allocation7 + $0x2e8] ss:$16 sps:$4 sm:$0xff]   ;;  %v4630_v26 = vld [vmem:[#allocation7 + $0x2ac] ss:$16 sps:$4 sm:$0xff]  }
 0x28f   :  { %v2104_v31 = vpop.f32.mrf.mxu1  ;;  %v2145_v32 = vpop.f32.mrf.mxu0  ;;  %v4628_v28 = vld [vmem:[#allocation7 + $0x2a8] ss:$16 sps:$4 sm:$0xff]  }
 0x290   :  { %v2247_v34 = vadd.bf16 %v2231_v25, %v2189_v29  ;;  %v4986_v37 = vmax.bf16 %v4818_v0, %v2246_v30  ;;  %v4627_v25 = vld [vmem:[#allocation7 + $0x2cc] ss:$16 sps:$4 sm:$0xff]   ;;  %v4672_v32 = vld [vmem:[#allocation8 + $0x70] sm:$0xff]  }
 0x291   :  { %v4633_v29 = vld [vmem:[#allocation7 + $0x28c] ss:$16 sps:$4 sm:$0xff]  }
 0x292   :  { %v2251_v35 = vmax.bf16 %v4818_v0, %v2247_v34  ;;  %v4670_v30 = vld [vmem:[#allocation8 + $0x78] sm:$0xff]  }
 0x293   :  { %v4671_v31 = vld [vmem:[#allocation8 + $0x38] sm:$0xff]  }
 0x294   :  { %3054 = vmatprep.mubr.bf16.mxu0 %v2251_v35  ;;  %v4631_v34 = vld [vmem:[#allocation7 + $0x288] ss:$16 sps:$4 sm:$0xff]  }
 0x295   :  { %3055 = vmatmul.mubr.bf16.vlgmr.msra.gmra.mxu0 %v4986_v37 }
 0x296   :  { %3105 = vmatpush1.bf16.msra.mxu0 %v4529_v36  ;;  %3136 = vmatprep.mubr.bf16.mxu0 %v2251_v35  ;;  %v4673_v35 = vld [vmem:[#allocation8 + $0x30] sm:$0xff]   ;;  %v4636_v36 = vld [vmem:[#allocation7 + $0x26c] ss:$16 sps:$4 sm:$0xff]  }
 0x297   :  { %3106 = vmatprep.subr.bf16.mxu0 %v4537_v38  ;;  %v4634_v38 = vld [vmem:[#allocation7 + $0x268] ss:$16 sps:$4 sm:$0xff]  }
 0x29a   :  { %3107 = vmatpush1.bf16.msra.mxu0 %v4535_v39  ;;  %v4675_v39 = vld [vmem:[#allocation8 + $0x28] sm:$0xff]  }
 0x29b   :  { %3108 = vmatprep.subr.bf16.mxu0 %v4543_v40  ;;  %v4639_v40 = vld [vmem:[#allocation7 + $0x24c] ss:$16 sps:$4 sm:$0xff]  }
 0x29e   :  { %3109 = vmatpush1.bf16.msra.mxu0 %v4541_v42  ;;  %v4676_v42 = vld [vmem:[#allocation8 + $0x60] sm:$0xff]  }
 0x29f   :  { %3110 = vmatprep.subr.bf16.mxu0 %v4549_v33  ;;  %v4637_v33 = vld [vmem:[#allocation7 + $0x248] ss:$16 sps:$4 sm:$0xff]  }
 0x2a2   :  { %3111 = vmatpush1.bf16.msra.mxu0 %v4547_v43  ;;  %v4677_v43 = vld [vmem:[#allocation8 + $0x20] sm:$0xff]  }
 0x2a3   :  { %3112 = vmatprep.subr.bf16.mxu0 %v4555_v44  ;;  %v4642_v44 = vld [vmem:[#allocation7 + $0x22c] ss:$16 sps:$4 sm:$0xff]  }
 0x2a6   :  { %3113 = vmatpush1.bf16.msra.mxu0 %v4553_v45  ;;  %v4678_v45 = vld [vmem:[#allocation8 + $0x58] sm:$0xff]  }
 0x2a7   :  { %3114 = vmatprep.subr.bf16.mxu0 %v4561_v41  ;;  %v4640_v41 = vld [vmem:[#allocation7 + $0x228] ss:$16 sps:$4 sm:$0xff]  }
 0x2aa   :  { %3115 = vmatpush1.bf16.msra.mxu0 %v4559_v46  ;;  %v4679_v46 = vld [vmem:[#allocation8 + $0x18] sm:$0xff]  }
 0x2ab   :  { %3116 = vmatprep.subr.bf16.mxu0 %v4567_v47  ;;  %v4645_v47 = vld [vmem:[#allocation7 + $0x20c] ss:$16 sps:$4 sm:$0xff]  }
 0x2ae   :  { %3117 = vmatpush1.bf16.msra.mxu0 %v4565_v48  ;;  %v4643_v48 = vld [vmem:[#allocation7 + $0x208] ss:$16 sps:$4 sm:$0xff]  }
 0x2af   :  { %3118 = vmatprep.subr.bf16.mxu0 %v4573_v49  ;;  %v4648_v49 = vld [vmem:[#allocation7 + $0x3ec] ss:$16 sps:$4 sm:$0xff]  }
 0x2b2   :  { %3119 = vmatpush1.bf16.msra.mxu0 %v4571_v50  ;;  %v4646_v50 = vld [vmem:[#allocation7 + $0x3e8] ss:$16 sps:$4 sm:$0xff]  }
 0x2b3   :  { %3120 = vmatprep.subr.bf16.mxu0 %v4579_v51  ;;  %v4651_v51 = vld [vmem:[#allocation7 + $0x3cc] ss:$16 sps:$4 sm:$0xff]  }
 0x2b6   :  { %3121 = vmatpush2.bf16.msra.mxu0 %v4577_v52  ;;  %v4649_v52 = vld [vmem:[#allocation7 + $0x3c8] ss:$16 sps:$4 sm:$0xff]  }
 0x2b7   :  { %3122 = vmatprep.subr.bf16.mxu0 %v4585_v53  ;;  %v4654_v53 = vld [vmem:[#allocation7 + $0x3ac] ss:$16 sps:$4 sm:$0xff]  }
 0x2ba   :  { %3123 = vmatpush2.bf16.msra.mxu0 %v4583_v54  ;;  %v4652_v54 = vld [vmem:[#allocation7 + $0x3a8] ss:$16 sps:$4 sm:$0xff]  }
 0x2bb   :  { %3124 = vmatprep.subr.bf16.mxu0 %v4591_v55  ;;  %v4657_v55 = vld [vmem:[#allocation7 + $0x38c] ss:$16 sps:$4 sm:$0xff]  }
 0x2be   :  { %3125 = vmatpush2.bf16.msra.mxu0 %v4589_v56  ;;  %v4655_v56 = vld [vmem:[#allocation7 + $0x388] ss:$16 sps:$4 sm:$0xff]  }
 0x2bf   :  { %3126 = vmatprep.subr.bf16.mxu0 %v4597_v57  ;;  %v4660_v57 = vld [vmem:[#allocation7 + $0x36c] ss:$16 sps:$4 sm:$0xff]  }
 0x2c2   :  { %3127 = vmatpush2.bf16.msra.mxu0 %v4595_v58  ;;  %v4658_v58 = vld [vmem:[#allocation7 + $0x368] ss:$16 sps:$4 sm:$0xff]  }
 0x2c3   :  { %3128 = vmatprep.subr.bf16.mxu0 %v4603_v59  ;;  %v4663_v59 = vld [vmem:[#allocation7 + $0x34c] ss:$16 sps:$4 sm:$0xff]  }
 0x2c6   :  { %3129 = vmatpush2.bf16.msra.mxu0 %v4601_v60  ;;  %v4661_v60 = vld [vmem:[#allocation7 + $0x348] ss:$16 sps:$4 sm:$0xff]  }
 0x2c7   :  { %3130 = vmatprep.subr.bf16.mxu0 %v4609_v62  ;;  %v4664_v62 = vld [vmem:[#allocation7 + $0x328] ss:$16 sps:$4 sm:$0xff]  }
 0x2c9   :  { %v2181_v5 = vpop.f32.mrf.mxu1 }
 0x2ca   :  { %v2182_v6 = vadd.f32 %v2181_v5, %v4978_v20  ;;  %3131 = vmatpush2.bf16.msra.mxu0 %v4607_v1  ;;  %v4667_v1 = vld [vmem:[#allocation7 + $0x308] ss:$16 sps:$4 sm:$0xff]  }
 0x2cb   :  { %v2183_v11 = vpop.f32.mrf.mxu1  ;;  %3132 = vmatprep.subr.bf16.mxu0 %v4615_v3  ;;  %v4681_v3 = vld [vmem:[#allocation8 + $0x10] sm:$0xff]   ;;  %v4683_v5 = vld [vmem:[#allocation8 + $0x8] sm:$0xff]  }
 0x2cc   :  { %v2190_v13 = vpack.c.bf16 %v2182_v6, %v2182_v6  ;;  %v2184_v15 = vadd.f32 %v2183_v11, %v4981_v9  ;;  %v4625_v9 = vld [vmem:[#allocation7 + $0x2c8] ss:$16 sps:$4 sm:$0xff]   ;;  %v4684_v6 = vld [vmem:[#allocation8 + $0x40] sm:$0xff]  }
 0x2cd   :  { %v2185_v17 = vpop.f32.mrf.mxu1  ;;  %v4687_v11 = vld [vmem:[#allocation8 + $0xb8] sm:$0xff]  }
 0x2ce   :  { %v2191_v18 = vpack.c.bf16 %v2184_v15, %v2184_v15  ;;  %3133 = vmatpush2.bf16.msra.mxu0 %v4613_v7  ;;  %v2248_v22 = vadd.bf16 %v2238_v8, %v2190_v13  ;;  %v4685_v7 = vld [vmem:[#allocation8] sm:$0xff]   ;;  %v4686_v8 = vld [vmem:[#allocation8 + $0xf8] sm:$0xff]   ;;  %v4689_v13 = vld [vmem:[#allocation8 + $0xb0] sm:$0xff]  }
 0x2cf   :  { %v2186_v23 = vpop.f32.mrf.mxu1  ;;  %3134 = vmatprep.subr.bf16.mxu0 %v4621_v12  ;;  %v4688_v12 = vld [vmem:[#allocation8 + $0xf0] sm:$0xff]   ;;  %v4690_v15 = vld [vmem:[#allocation8 + $0xe8] sm:$0xff]   ;;  %v4692_v17 = vld [vmem:[#allocation8 + $0xe0] sm:$0xff]  }
 0x2d0   :  { %v2249_v20 = vadd.bf16 %v2245_v16, %v2191_v18  ;;  %v4999_v10 = vmax.bf16 %v4818_v0, %v2248_v22  ;;  %v4691_v16 = vld [vmem:[#allocation8 + $0xa8] sm:$0xff]   ;;  %v4693_v18 = vld [vmem:[#allocation8 + $0xa0] sm:$0xff]   ;;  %v4695_v22 = vld [vmem:[#allocation8 + $0x98] sm:$0xff]  }
 0x2d1   :  { %v4696_v23 = vld [vmem:[#allocation8 + $0xd0] sm:$0xff]  }
 0x2d2   :  { %3135 = vmatpush2.bf16.msra.mxu0 %v4619_v19  ;;  %v2253_v21 = vmax.bf16 %v4818_v0, %v2249_v20  ;;  %v4694_v19 = vld [vmem:[#allocation8 + $0xd8] sm:$0xff]   ;;  %v4697_v20 = vld [vmem:[#allocation8 + $0x90] sm:$0xff]  }
 0x2d3   :  { %4036 = vmatprep.subr.bf16.mxu0 %v4670_v30  ;;  %v4002_v30 = vld.sshfl [vmem:[%s5031_s8] sm:$0x33 pattern:$0x75316420] }
 0x2d4   :  { %3095 = vmatprep.mubr.bf16.mxu1 %v2253_v21 }
 0x2d5   :  { %3096 = vmatmul.mubr.bf16.vlgmr.msra.gmra.mxu1 %v4999_v10  ;;  %3137 = vmatmul.mubr.bf16.vlgmr.msra.gmra.mxu0 %v4986_v37  ;;  %v4674_v37 = vld [vmem:[#allocation8 + $0x68] sm:$0xff]  }
 0x2d6   :  { %3146 = vmatpush1.bf16.msra.mxu1 %v4622_v24  ;;  %3177 = vmatprep.mubr.bf16.mxu1 %v2253_v21 }
 0x2d7   :  { %3147 = vmatprep.subr.bf16.mxu1 %v4627_v25  ;;  %4037 = vmatpush3.bf16.msra.mxu0 %v4671_v31  ;;  %v4699_v25 = vld [vmem:[#allocation8 + $0x88] sm:$0xff]   ;;  %v3199_v31 = vcombine.high %v4002_v30, %v4002_v30 }
 0x2d8   :  { %4038 = vmatprep.subr.bf16.mxu0 %v4672_v32  ;;  %v3206_v32 = vrot.slane %v4002_v30, %v4904_v14 }
 0x2da   :  { %3148 = vmatpush1.bf16.msra.mxu1 %v4625_v9 }
 0x2db   :  { %3149 = vmatprep.subr.bf16.mxu1 %v4630_v26  ;;  %4039 = vmatpush3.bf16.msra.mxu0 %v4673_v35  ;;  %v3217_v35 = vpack.i.b16 %v3206_v32, %v3206_v32 }
 0x2dc   :  { %4040 = vmatprep.subr.bf16.mxu0 %v4674_v37 }
 0x2de   :  { %3150 = vmatpush1.bf16.msra.mxu1 %v4628_v28  ;;  %v4700_v28 = vld [vmem:[#allocation8 + $0xc0] sm:$0xff]  }
 0x2df   :  { %3151 = vmatprep.subr.bf16.mxu1 %v4633_v29  ;;  %4041 = vmatpush3.bf16.msra.mxu0 %v4675_v39  ;;  %v4701_v29 = vld [vmem:[#allocation8 + $0x80] sm:$0xff]  }
 0x2e0   :  { %4042 = vmatprep.subr.bf16.mxu0 %v4676_v42 }
 0x2e2   :  { %3152 = vmatpush1.bf16.msra.mxu1 %v4631_v34  ;;  %v3213_v34 = vrot.slane %v3199_v31, %v4904_v14 }
 0x2e3   :  { %3153 = vmatprep.subr.bf16.mxu1 %v4636_v36  ;;  %4043 = vmatpush3.bf16.msra.mxu0 %v4677_v43 }
 0x2e4   :  { %4044 = vmatprep.subr.bf16.mxu0 %v4678_v45  ;;  %v3224_v36 = vpack.i.b16 %v3213_v34, %v3213_v34 }
 0x2e6   :  { %3154 = vmatpush1.bf16.msra.mxu1 %v4634_v38  ;;  %v3229_v45 = vrot.slane %v3224_v36, %v4910_v27 }
 0x2e7   :  { %3155 = vmatprep.subr.bf16.mxu1 %v4639_v40  ;;  %4045 = vmatpush3.bf16.msra.mxu0 %v4679_v46  ;;  %v3222_v40 = vrot.slane %v3217_v35, %v4910_v27 }
 0x2e8   :  { %4046 = vmatprep.subr.bf16.mxu0 %v4680_v2 }
 0x2ea   :  { %3156 = vmatpush1.bf16.msra.mxu1 %v4637_v33 }
 0x2eb   :  { %3157 = vmatprep.subr.bf16.mxu1 %v4642_v44  ;;  %4047 = vmatpush3.bf16.msra.mxu0 %v4681_v3 }
 0x2ec   :  { %4048 = vmatprep.subr.bf16.mxu0 %v4682_v4 }
 0x2ee   :  { %3158 = vmatpush1.bf16.msra.mxu1 %v4640_v41 }
 0x2ef   :  { %3159 = vmatprep.subr.bf16.mxu1 %v4645_v47  ;;  %4049 = vmatpush3.bf16.msra.mxu0 %v4683_v5 }
 0x2f0   :  { %4050 = vmatprep.subr.bf16.mxu0 %v4684_v6 }
 0x2f2   :  { %3160 = vmatpush1.bf16.msra.mxu1 %v4643_v48 }
 0x2f3   :  { %3161 = vmatprep.subr.bf16.mxu1 %v4648_v49  ;;  %4051 = vmatpush3.bf16.msra.mxu0 %v4685_v7 }
 0x2f6   :  { %3162 = vmatpush2.bf16.msra.mxu1 %v4646_v50 }
 0x2f7   :  { %3163 = vmatprep.subr.bf16.mxu1 %v4651_v51 }
 0x2fa   :  { %3164 = vmatpush2.bf16.msra.mxu1 %v4649_v52 }
 0x2fb   :  { %3165 = vmatprep.subr.bf16.mxu1 %v4654_v53  ;;  %v3214_v53 = vcombine.high %v3206_v32, %v3206_v32 }
 0x2fe   :  { %3166 = vmatpush2.bf16.msra.mxu1 %v4652_v54  ;;  %v3215_v54 = vcombine.high %v3213_v34, %v3213_v34 }
 0x2ff   :  { %3167 = vmatprep.subr.bf16.mxu1 %v4657_v55  ;;  %v3231_v55 = vpack.i.b16 %v3214_v53, %v3214_v53 }
 0x302   :  { %3168 = vmatpush2.bf16.msra.mxu1 %v4655_v56  ;;  %v3238_v56 = vpack.i.b16 %v3215_v54, %v3215_v54 }
 0x303   :  { %3169 = vmatprep.subr.bf16.mxu1 %v4660_v57 }
 0x306   :  { %3170 = vmatpush2.bf16.msra.mxu1 %v4658_v58 }
 0x307   :  { %3171 = vmatprep.subr.bf16.mxu1 %v4663_v59  ;;  %v3236_v59 = vrot.slane %v3231_v55, %v4910_v27 }
 0x30a   :  { %3172 = vmatpush2.bf16.msra.mxu1 %v4661_v60 }
 0x30b   :  { %3173 = vmatprep.subr.bf16.mxu1 %v4666_v61 }
 0x30e   :  { %3174 = vmatpush2.bf16.msra.mxu1 %v4664_v62 }
 0x30f   :  { %3175 = vmatprep.subr.bf16.mxu1 %v4669_v63  ;;  %v3243_v63 = vrot.slane %v3238_v56, %v4910_v27  ;;  %v4003_v27 = vld [vmem:[%s5033_s10] ss:$0 sm:$0xff] }
 0x312   :  { %3176 = vmatpush2.bf16.msra.mxu1 %v4667_v1 }
 0x313   :  { %4058 = vmatprep.subr.bf16.mxu1 %v4686_v8 }
 0x315   :  { %3178 = vmatmul.mubr.bf16.vlgmr.msra.gmra.mxu1 %v4999_v10  ;;  %v4698_v10 = vld [vmem:[#allocation8 + $0xc8] sm:$0xff]  }
 0x316   :  { %4059 = vmatpush3.bf16.msra.mxu1 %v4687_v11 }
 0x317   :  { %4060 = vmatprep.subr.bf16.mxu1 %v4688_v12 }
 0x31a   :  { %4061 = vmatpush3.bf16.msra.mxu1 %v4689_v13 }
 0x31b   :  { %4062 = vmatprep.subr.bf16.mxu1 %v4690_v15 }
 0x31e   :  { %4063 = vmatpush3.bf16.msra.mxu1 %v4691_v16 }
 0x31f   :  { %4064 = vmatprep.subr.bf16.mxu1 %v4692_v17 }
 0x322   :  { %4065 = vmatpush3.bf16.msra.mxu1 %v4693_v18 }
 0x323   :  { %4066 = vmatprep.subr.bf16.mxu1 %v4694_v19 }
 0x326   :  { %4067 = vmatpush3.bf16.msra.mxu1 %v4695_v22 }
 0x327   :  { %4068 = vmatprep.subr.bf16.mxu1 %v4696_v23 }
 0x32a   :  { %4069 = vmatpush3.bf16.msra.mxu1 %v4697_v20 }
 0x32b   :  { %4070 = vmatprep.subr.bf16.mxu1 %v4698_v10 }
 0x32e   :  { %4071 = vmatpush3.bf16.msra.mxu1 %v4699_v25 }
 0x32f   :  { %4072 = vmatprep.subr.bf16.mxu1 %v4700_v28 }
 0x332   :  { %4073 = vmatpush3.bf16.msra.mxu1 %v4701_v29 }
 0x355   :  { %v3056_v21 = vpop.f32.mrf.mxu0 }
 0x357   :  { %v3058_v24 = vpop.f32.mrf.mxu0 }
 0x359   :  { %v3060_v9 = vpop.f32.mrf.mxu0 }
 0x35b   :  { %v3061_v26 = vpop.f32.mrf.mxu0 }
 0x395   :  { %v3097_v37 = vpop.f32.mrf.mxu1  ;;  %v3138_v38 = vpop.f32.mrf.mxu0 }
 0x396   :  { %v3098_v39 = vadd.f32 %v3097_v37, %v3056_v21 }
 0x397   :  { %v3099_v42 = vpop.f32.mrf.mxu1  ;;  %v3140_v33 = vpop.f32.mrf.mxu0 }
 0x398   :  { %v3186_v43 = vpack.c.bf16 %v3098_v39, %v3098_v39  ;;  %v3100_v44 = vadd.f32 %v3099_v42, %v3058_v24 }
 0x399   :  { %v3101_v41 = vpop.f32.mrf.mxu1  ;;  %v3142_v46 = vpop.f32.mrf.mxu0 }
 0x39a   :  { %v3187_v47 = vpack.c.bf16 %v3100_v44, %v3100_v44  ;;  %v3244_v48 = vadd.bf16 %v3222_v40, %v3186_v43 }
 0x39b   :  { %v3102_v49 = vpop.f32.mrf.mxu1  ;;  %v3143_v50 = vpop.f32.mrf.mxu0 }
 0x39c   :  { %v3245_v14 = vadd.bf16 %v3229_v45, %v3187_v47  ;;  %v3248_v52 = vmax.bf16 %v4818_v0, %v3244_v48 }
 0x39e   :  { %v3249_v51 = vmax.bf16 %v4818_v0, %v3245_v14 }
 0x3a0   :  { %3547 = vmatprep.mubr.bf16.mxu0 %v3249_v51 }
 0x3a1   :  { %3548 = vmatmul.mubr.bf16.vlgmr.msra.gmra.mxu0 %v3248_v52 }
 0x3d5   :  { %v3179_v57 = vpop.f32.mrf.mxu1 }
 0x3d6   :  { %v3180_v58 = vadd.f32 %v3179_v57, %v3138_v38 }
 0x3d7   :  { %v3181_v60 = vpop.f32.mrf.mxu1 }
 0x3d8   :  { %v3188_v61 = vpack.c.bf16 %v3180_v58, %v3180_v58  ;;  %v3182_v62 = vadd.f32 %v3181_v60, %v3140_v33 }
 0x3d9   :  { %v3183_v1 = vpop.f32.mrf.mxu1 }
 0x3da   :  { %v3189_v2 = vpack.c.bf16 %v3182_v62, %v3182_v62  ;;  %v3246_v3 = vadd.bf16 %v3236_v59, %v3188_v61 }
 0x3db   :  { %v3184_v4 = vpop.f32.mrf.mxu1 }
 0x3dc   :  { %v3247_v5 = vadd.bf16 %v3243_v63, %v3189_v2  ;;  %v3250_v7 = vmax.bf16 %v4818_v0, %v3246_v3 }
 0x3de   :  { %v3251_v6 = vmax.bf16 %v4818_v0, %v3247_v5 }
 0x3e0   :  { %3587 = vmatprep.mubr.bf16.mxu1 %v3251_v6 }
 0x3e1   :  { %3588 = vmatmul.mubr.bf16.vlgmr.msra.gmra.mxu1 %v3250_v7 }
 0x461   :  { %v4052_v8 = vpop.f32.mrf.mxu0 }
 0x463   :  { %v4053_v11 = vpop.f32.mrf.mxu0 }
 0x464   :  { %v4054_v15 = vadd.f32 %v4053_v11, %v4052_v8 }
 0x465   :  { %v4055_v12 = vpop.f32.mrf.mxu0 }
 0x466   :  { %v3550_v18 = vadd.f32 %v4054_v15, %v4003_v27 }
 0x467   :  { %v4056_v13 = vpop.f32.mrf.mxu0 }
 0x4a1   :  { %v4074_v16 = vpop.f32.mrf.mxu1 }
 0x4a3   :  { %v4075_v17 = vpop.f32.mrf.mxu1 }
 0x4a4   :  { %v4076_v19 = vadd.f32 %v4075_v17, %v4074_v16 }
 0x4a5   :  { %v4077_v22 = vpop.f32.mrf.mxu1 }
 0x4a6   :  { %v3590_v23 = vadd.f32 %v4076_v19, %v3550_v18 }
 0x4a7   :  { %v4078_v0 = vpop.f32.mrf.mxu1 }
 0x4a8   :  { %v3595_v20 = vpack.c.bf16 %v3590_v23, %v3590_v23 }
 0x4aa   :  { %3596 = vst [vmem:[#allocation10] sm:$0xf] %v3595_v20 }
 0x4ab   :  { %4793 = shalt.err (!%p4790_p10)
}
 0x4ac   :  { %3606 = dma.vmem_to_hbm [thread:$0]  %s3604_s27, 64, %s5034_s11, [#allocation4]  }
 0x4ad   :  { %4808 = dma.done.wait [#allocation4], 64  }
 0x4ae   :  { %4809 = vsyncadd [#allocation4], 4294967232 }
 0x4af   :  { %3610 = vsyncpa [#allocation3], 1 }
 0x4b0   :  { %3611 = vsyncpa [#allocation6], 1 }
 0x4b1   :  { %3612 = vsyncpa [#allocation9], 1 }
 0x4b2   :  { %3613 = vsyncpa [#allocation4], 1 }

</bundles_post_ra>
